<compile_context>
chip_gen: v7x
topology: tpu7x:2x2x1
jax: 0.10.0
libtpu: 0.0.40
codegen_flags: <defaults>
</compile_context>

<pallas_src>
import math
import functools

import jax
import jax.numpy as jnp
import numpy as np
from jax.experimental import pallas as pl
from jax.experimental.pallas import tpu as pltpu

BN_EPS = 1e-5

FUSED_ORDER = [
    "in_w", "in_b",
    "f_fc2_w", "f_fc2_b", "f_gate_w", "f_gate_b", "f_bn_scale", "f_bn_shift",
    "s_fc2_w", "s_fc2_b", "s_gate_w", "s_gate_b", "s_bn_scale", "s_bn_shift",
    "expand_mat", "sum_mat",
]


def _round_up(x, m):
    return ((x + m - 1) // m) * m


def _cdiv(a, b):
    return -(-a // b)


def _elu(x):
    # ELU(alpha=1): x if x > 0 else exp(x) - 1   (reference-side helper)
    return jnp.where(x > 0, x, jnp.expm1(jnp.minimum(x, 0.0)))


def _layout(num_vars, hidden):
    """Lane layout shared by the packer and the kernel (all groups 128-aligned)."""
    V, H = num_vars, hidden
    VH = V * H
    wV = _round_up(V, 128)
    wH = _round_up(H, 128)
    wVH = _round_up(VH, 128)
    return {
        "VH": VH, "wV": wV, "wH": wH, "wVH": wVH,
        "o_fskip": 0,                   # f-GRN skip columns
        "o_ffc1": wV,                   # f-GRN fc1 (+ context) columns
        "o_sfc1": wV + wH,              # block-diag per-variable fc1 columns
        "o_sskip": wV + wH + wVH,       # block-diag per-variable skip columns
        "in_width": wV + wH + 2 * wVH,  # fused first-matmul output width
        "out_width": _round_up(H + V, 128),
    }


# ----------------------------------------------------------------------------
# Pure-JAX reference (mirrors the PyTorch forward, eval mode).
# ----------------------------------------------------------------------------
def _grn(x, skip_w, skip_b, fc1_w, fc1_b, fc2_w, fc2_b,
         g1_w, g1_b, g2_w, g2_b, bn, ctx=None, ctx_w=None, ctx_b=None):
    residual = jnp.dot(x, skip_w, preferred_element_type=jnp.float32) + skip_b
    h = jnp.dot(x, fc1_w, preferred_element_type=jnp.float32) + fc1_b
    if ctx is not None:
        h = h + jnp.dot(ctx, ctx_w, preferred_element_type=jnp.float32) + ctx_b
    h = _elu(h)
    y = jnp.dot(h, fc2_w, preferred_element_type=jnp.float32) + fc2_b
    sig = jax.nn.sigmoid(jnp.dot(y, g1_w, preferred_element_type=jnp.float32) + g1_b)
    lin = jnp.dot(y, g2_w, preferred_element_type=jnp.float32) + g2_b
    y = sig * lin + residual
    gamma, beta, mean, var = bn[0:1], bn[1:2], bn[2:3], bn[3:4]
    return (y - mean) * (gamma * jax.lax.rsqrt(var + BN_EPS)) + beta


def make_vsn_params(key, num_vars, input_size, hidden, ctx_size):
    """Deterministic parameter init (PyTorch nn.Linear default uniform init)."""
    keys = jax.random.split(key, 64)
    it = iter(keys)

    def lin(fan_in, fan_out):
        k1, k2 = jax.random.split(next(it))
        bound = 1.0 / math.sqrt(max(fan_in, 1))
        w = jax.random.uniform(k1, (fan_in, fan_out), jnp.float32, -bound, bound)
        b = jax.random.uniform(k2, (1, fan_out), jnp.float32, -bound, bound)
        return w, b

    def bn_params(dim):
        return jnp.stack([jnp.ones(dim), jnp.zeros(dim),
                          jnp.zeros(dim), jnp.ones(dim)]).astype(jnp.float32)

    F = num_vars * input_size
    p = {}
    p["f_skip_w"], p["f_skip_b"] = lin(F, num_vars)
    p["f_fc1_w"], p["f_fc1_b"] = lin(F, hidden)
    p["f_ctx_w"], p["f_ctx_b"] = lin(ctx_size, hidden)
    p["f_fc2_w"], p["f_fc2_b"] = lin(hidden, num_vars)
    p["f_g1_w"], p["f_g1_b"] = lin(num_vars, num_vars)
    p["f_g2_w"], p["f_g2_b"] = lin(num_vars, num_vars)
    p["f_bn"] = bn_params(num_vars)

    def stack_lin(fan_in, fan_out):
        ws, bs = [], []
        for _ in range(num_vars):
            w, b = lin(fan_in, fan_out)
            ws.append(w)
            bs.append(b)
        return jnp.stack(ws), jnp.stack(bs)  # (V, in, out), (V, 1, out)

    p["s_skip_w"], p["s_skip_b"] = stack_lin(input_size, hidden)
    p["s_fc1_w"], p["s_fc1_b"] = stack_lin(input_size, hidden)
    p["s_fc2_w"], p["s_fc2_b"] = stack_lin(hidden, hidden)
    p["s_g1_w"], p["s_g1_b"] = stack_lin(hidden, hidden)
    p["s_g2_w"], p["s_g2_b"] = stack_lin(hidden, hidden)
    p["s_bn"] = jnp.tile(bn_params(hidden)[None], (num_vars, 1, 1))
    return p


def vsn_reference(embedding, context, params, *, num_vars, input_size, hidden,
                  ctx_size):
    T, B, F = embedding.shape
    x = embedding.reshape(-1, F)
    c = context.reshape(-1, ctx_size)
    g = _grn(x,
             params["f_skip_w"], params["f_skip_b"],
             params["f_fc1_w"], params["f_fc1_b"],
             params["f_fc2_w"], params["f_fc2_b"],
             params["f_g1_w"], params["f_g1_b"],
             params["f_g2_w"], params["f_g2_b"],
             params["f_bn"],
             ctx=c, ctx_w=params["f_ctx_w"], ctx_b=params["f_ctx_b"])
    probs = jax.nn.softmax(g, axis=-1)
    sel = jnp.zeros((x.shape[0], hidden), jnp.float32)
    for i in range(num_vars):
        xi = x[:, i * input_size:(i + 1) * input_size]
        pv = _grn(xi,
                  params["s_skip_w"][i], params["s_skip_b"][i],
                  params["s_fc1_w"][i], params["s_fc1_b"][i],
                  params["s_fc2_w"][i], params["s_fc2_b"][i],
                  params["s_g1_w"][i], params["s_g1_b"][i],
                  params["s_g2_w"][i], params["s_g2_b"][i],
                  params["s_bn"][i])
        sel = sel + pv * probs[:, i:i + 1]
    return sel.reshape(T, B, hidden), probs.reshape(T, B, num_vars)


# ----------------------------------------------------------------------------
# One-time parameter packing (hoisted out of the per-call path).
# ----------------------------------------------------------------------------
def pack_vsn_params(p, *, num_vars, input_size, hidden, ctx_size,
                    matmul_dtype=jnp.bfloat16):
    V, I, H = num_vars, input_size, hidden
    C = ctx_size
    F = V * I
    L = _layout(V, H)
    VH, wV, wVH = L["VH"], L["wV"], L["wVH"]
    wd = matmul_dtype

    def block_diag(ws):                      # (V, din, dout) -> (V*din, V*dout)
        nv, din, dout = ws.shape
        out = jnp.zeros((nv * din, nv * dout), ws.dtype)
        for v in range(nv):
            out = out.at[v * din:(v + 1) * din, v * dout:(v + 1) * dout].set(ws[v])
        return out

    # Eval-mode BatchNorm folded to y*scale + shift.
    fg, fb, fm, fv = (p["f_bn"][i:i + 1] for i in range(4))        # each (1, V)
    f_scale = fg * jax.lax.rsqrt(fv + BN_EPS)
    f_shift = fb - fm * f_scale
    sg_, sb_, sm_, sv_ = (p["s_bn"][:, i, :] for i in range(4))    # each (V, H)
    s_scale = sg_ * jax.lax.rsqrt(sv_ + BN_EPS)
    s_shift = sb_ - sm_ * s_scale

    # Fused first matmul over [x | c] (K = F + C).  Output groups at 128-lane
    # boundaries: [ f_skip | f_fc1 + ctx | blockdiag(s_fc1) | blockdiag(s_skip) ].
    in_w = jnp.zeros((F + C, L["in_width"]), jnp.float32)
    in_w = in_w.at[:F, L["o_fskip"]:L["o_fskip"] + V].set(p["f_skip_w"])
    in_w = in_w.at[:F, L["o_ffc1"]:L["o_ffc1"] + H].set(p["f_fc1_w"])
    in_w = in_w.at[F:, L["o_ffc1"]:L["o_ffc1"] + H].set(p["f_ctx_w"])
    in_w = in_w.at[:F, L["o_sfc1"]:L["o_sfc1"] + VH].set(block_diag(p["s_fc1_w"]))
    in_w = in_w.at[:F, L["o_sskip"]:L["o_sskip"] + VH].set(block_diag(p["s_skip_w"]))
    in_b = jnp.zeros((1, L["in_width"]), jnp.float32)
    in_b = in_b.at[:, L["o_fskip"]:L["o_fskip"] + V].set(p["f_skip_b"])
    in_b = in_b.at[:, L["o_ffc1"]:L["o_ffc1"] + H].set(p["f_fc1_b"] + p["f_ctx_b"])
    in_b = in_b.at[:, L["o_sfc1"]:L["o_sfc1"] + VH].set(p["s_fc1_b"].reshape(1, VH))
    in_b = in_b.at[:, L["o_sskip"]:L["o_sskip"] + VH].set(p["s_skip_b"].reshape(1, VH))

    # f-GRN gate: g1 -> lanes [0, wV), g2 -> [wV, 2*wV)  (128-aligned groups)
    f_gate_w = jnp.zeros((V, 2 * wV), jnp.float32)
    f_gate_w = f_gate_w.at[:, 0:V].set(p["f_g1_w"])
    f_gate_w = f_gate_w.at[:, wV:wV + V].set(p["f_g2_w"])
    f_gate_b = jnp.zeros((1, 2 * wV), jnp.float32)
    f_gate_b = f_gate_b.at[:, 0:V].set(p["f_g1_b"])
    f_gate_b = f_gate_b.at[:, wV:wV + V].set(p["f_g2_b"])

    # s-GRN gate (block-diag over the V variables): g1 -> [0,wVH), g2 -> [wVH,2wVH)
    s_gate_w = jnp.zeros((VH, 2 * wVH), jnp.float32)
    s_gate_w = s_gate_w.at[:, 0:VH].set(block_diag(p["s_g1_w"]))
    s_gate_w = s_gate_w.at[:, wVH:wVH + VH].set(block_diag(p["s_g2_w"]))
    s_gate_b = jnp.zeros((1, 2 * wVH), jnp.float32)
    s_gate_b = s_gate_b.at[:, 0:VH].set(p["s_g1_b"].reshape(1, VH))
    s_gate_b = s_gate_b.at[:, wVH:wVH + VH].set(p["s_g2_b"].reshape(1, VH))

    # Constant combination matrices: broadcast probs V->VH and pack the
    # probability-weighted sum into lanes [0, H) of the output slab.
    expand_mat = jnp.repeat(jnp.eye(V, dtype=jnp.float32), H, axis=1)       # (V, VH)
    sum_mat = jnp.zeros((VH, L["out_width"]), jnp.float32)
    sum_mat = sum_mat.at[:, :H].set(jnp.tile(jnp.eye(H, dtype=jnp.float32), (V, 1)))

    return {
        "in_w": in_w.astype(wd), "in_b": in_b,
        "f_fc2_w": p["f_fc2_w"].astype(wd), "f_fc2_b": p["f_fc2_b"],
        "f_gate_w": f_gate_w.astype(wd), "f_gate_b": f_gate_b,
        "f_bn_scale": f_scale, "f_bn_shift": f_shift,
        "s_fc2_w": block_diag(p["s_fc2_w"]).astype(wd),
        "s_fc2_b": p["s_fc2_b"].reshape(1, VH),
        "s_gate_w": s_gate_w.astype(wd), "s_gate_b": s_gate_b,
        "s_bn_scale": s_scale.reshape(1, VH), "s_bn_shift": s_shift.reshape(1, VH),
        "expand_mat": expand_mat.astype(wd), "sum_mat": sum_mat.astype(wd),
    }


# ----------------------------------------------------------------------------
# Pallas kernel
# ----------------------------------------------------------------------------
def _vsn_kernel(emb_ref, ctx_ref, *refs, num_vars, hidden):
    n_params = len(FUSED_ORDER)
    q = dict(zip(FUSED_ORDER, refs[:n_params]))
    out_ref = refs[n_params]
    V, H = num_vars, hidden
    L = _layout(V, H)
    VH, wV, wH, wVH = L["VH"], L["wV"], L["wH"], L["wVH"]
    out_w = out_ref.shape[-1]

    def mm(a, name):
        w = q[name][...]
        # MXU operands in the packed weight dtype (bf16/f32); f32 accumulation.
        # Each operand is used in exactly one matmul, so each is cast once.
        return jnp.dot(a.astype(w.dtype), w, preferred_element_type=jnp.float32)

    def sigmoid(z):                       # exp + divide only (safe lowering)
        return 1.0 / (1.0 + jnp.exp(-z))

    def elu(z):                           # ELU(alpha=1) via exp (safe lowering)
        return jnp.where(z > 0, z, jnp.exp(jnp.minimum(z, 0.0)) - 1.0)

    # ---- one deep-K matmul over [x | c]: f_skip | f_fc1(+ctx) | s_fc1 | s_skip
    xc = jnp.concatenate([emb_ref[...], ctx_ref[...]], axis=-1)
    o1 = mm(xc, "in_w") + q["in_b"][...]

    f_resid = o1[:, 0:V]                                  # lane-0 slice
    act = elu(o1[:, wV:wV + wH + wVH])                    # f_fc1 + s_fc1 groups, one ELU
    f_h = act[:, 0:H]
    s_h = act[:, wH:wH + VH]
    s_resid = o1[:, L["o_sskip"]:L["o_sskip"] + VH]

    # ---- flattened GRN tail -> softmax weights over variables ---------------
    y_f = mm(f_h, "f_fc2_w") + q["f_fc2_b"][...]          # (TR, V)
    go = mm(y_f, "f_gate_w") + q["f_gate_b"][...]         # g1 @ [0,wV), g2 @ [wV,..)
    g = sigmoid(go[:, 0:V]) * go[:, wV:wV + V] + f_resid
    g = g * q["f_bn_scale"][...] + q["f_bn_shift"][...]   # folded eval-BN

    gm = jnp.max(g, axis=-1, keepdims=True)
    e = jnp.exp(g - gm)
    probs = e * pl.reciprocal(jnp.sum(e, axis=-1, keepdims=True), approx=True)

    # ---- all V per-variable GRNs as 128-wide block-diagonal matmuls ---------
    y_s = mm(s_h, "s_fc2_w") + q["s_fc2_b"][...]          # (TR, VH)
    sg = mm(y_s, "s_gate_w") + q["s_gate_b"][...]         # g1 @ [0,wVH), g2 @ [wVH,..)
    out_all = sigmoid(sg[:, 0:VH]) * sg[:, wVH:wVH + VH] + s_resid
    out_all = out_all * q["s_bn_scale"][...] + q["s_bn_shift"][...]

    # ---- probability-weighted sum + lane-dense [sel | probs | 0] packing ----
    p_exp = mm(probs, "expand_mat")                       # probs broadcast to VH lanes
    packed = mm(out_all * p_exp, "sum_mat")               # sel in lanes [0, H), rest 0
    pieces = [jnp.zeros((probs.shape[0], H), jnp.float32), probs]
    if out_w > H + V:
        pieces.append(jnp.zeros((probs.shape[0], out_w - H - V), jnp.float32))
    probs_placed = jnp.concatenate(pieces, axis=-1)       # VPU/XLU shift, no K=4 matmul
    out_ref[...] = (packed + probs_placed).astype(out_ref.dtype)   # single full store


# ----------------------------------------------------------------------------
# Wrapper (TimeDistributed flatten / un-flatten; no wrapper-side padding)
# ----------------------------------------------------------------------------
def vsn_forward(embedding, context, packed, *, num_vars, hidden, tile_rows=512):
    """embedding: (T, B, num_vars*input_size), context: (T, B, ctx_size).

    `packed` comes from pack_vsn_params (computed ONCE, outside this function).
    Returns (selected (T,B,hidden), variable_probs (T,B,num_vars)), f32.
    """
    T, B, F = embedding.shape
    C = context.shape[-1]
    N = T * B
    V, H = num_vars, hidden
    out_w = _layout(V, H)["out_width"]

    emb_flat = embedding.reshape(N, F)
    ctx_flat = context.reshape(N, C)

    # Row tile: large (amortise the ~0.35us/step overhead), capped at 1024 so
    # intermediates fit the 32 MiB VMEM budget on every generation, and capped
    # so the grid has >=2 steps whenever possible (v7x has 2 TensorCores).
    tr = min(int(tile_rows), 1024, _round_up(_cdiv(N, 2), 8))
    tr = max(8, _round_up(tr, 8))
    grid = _cdiv(N, tr)        # ragged tail block is masked by Pallas (no jnp.pad)

    def row_spec(width):
        return pl.BlockSpec((tr, width), lambda r: (r, 0))

    def const_spec(arr):
        nd = arr.ndim
        return pl.BlockSpec(arr.shape, lambda r, _nd=nd: (0,) * _nd)

    in_specs = ([row_spec(F), row_spec(C)]
                + [const_spec(packed[k]) for k in FUSED_ORDER])

    kernel = functools.partial(_vsn_kernel, num_vars=V, hidden=H)

    out = pl.pallas_call(
        kernel,
        out_shape=jax.ShapeDtypeStruct((N, out_w), jnp.float32),
        grid_spec=pltpu.PrefetchScalarGridSpec(
            num_scalar_prefetch=0,
            grid=(grid,),
            in_specs=in_specs,
            out_specs=row_spec(out_w),
        ),
        compiler_params=pltpu.CompilerParams(
            dimension_semantics=("parallel",),
            vmem_limit_bytes=32 * 1024 * 1024,
        ),
    )(emb_flat, ctx_flat, *[packed[k] for k in FUSED_ORDER])

    sel = out[:, :H].reshape(T, B, H)
    probs = out[:, H:H + V].reshape(T, B, V)
    return sel, probs


if __name__ == "__main__":
    # Small shapes consistent with the module:
    #   timesteps T=8, batch B=4, num_inputs V=4, input_size I=8,
    #   hidden_size H=32, context_input_size C=16
    T, B, V, I, H, C = 8, 4, 4, 8, 32, 16

    key = jax.random.PRNGKey(0)
    k_emb, k_ctx, k_par, k_emb2, k_ctx2 = jax.random.split(key, 5)
    embedding = jax.random.normal(k_emb, (T, B, V * I), dtype=jnp.float32)
    context = jax.random.normal(k_ctx, (T, B, C), dtype=jnp.float32)
    params = make_vsn_params(k_par, V, I, H, C)

    sel_ref, probs_ref = vsn_reference(embedding, context, params, num_vars=V,
                                       input_size=I, hidden=H, ctx_size=C)

    fwd = jax.jit(vsn_forward, static_argnames=("num_vars", "hidden", "tile_rows"))

    # f32 MXU operands: tight tolerance vs. the f32 reference (all generations).
    packed_f32 = pack_vsn_params(params, num_vars=V, input_size=I, hidden=H,
                                 ctx_size=C, matmul_dtype=jnp.float32)
    sel, probs = fwd(embedding, context, packed_f32, num_vars=V, hidden=H)
    sel = jax.block_until_ready(sel)
    probs = jax.block_until_ready(probs)
    assert sel.shape == (T, B, H) and probs.shape == (T, B, V)
    np.testing.assert_allclose(np.asarray(sel), np.asarray(sel_ref),
                               rtol=2e-3, atol=2e-3)
    np.testing.assert_allclose(np.asarray(probs), np.asarray(probs_ref),
                               rtol=2e-3, atol=2e-3)

    # bf16 MXU operands (default fast path on v5e/v6e/v7x); f32 accumulation
    # and f32 elementwise math.
    packed_bf16 = pack_vsn_params(params, num_vars=V, input_size=I, hidden=H,
                                  ctx_size=C, matmul_dtype=jnp.bfloat16)
    sel_bf, probs_bf = fwd(embedding, context, packed_bf16, num_vars=V, hidden=H)
    sel_bf = jax.block_until_ready(sel_bf)
    probs_bf = jax.block_until_ready(probs_bf)
    np.testing.assert_allclose(np.asarray(sel_bf), np.asarray(sel_ref),
                               rtol=2e-2, atol=2e-2)
    np.testing.assert_allclose(np.asarray(probs_bf), np.asarray(probs_ref),
                               rtol=2e-2, atol=2e-2)

    # Ragged-tail path (N not a multiple of the row tile) to exercise the
    # masked edge blocks that replaced the wrapper-side jnp.pad.
    T2, B2 = 7, 3
    emb2 = jax.random.normal(k_emb2, (T2, B2, V * I), dtype=jnp.float32)
    ctx2 = jax.random.normal(k_ctx2, (T2, B2, C), dtype=jnp.float32)
    sel2_ref, probs2_ref = vsn_reference(emb2, ctx2, params, num_vars=V,
                                         input_size=I, hidden=H, ctx_size=C)
    sel2, probs2 = fwd(emb2, ctx2, packed_f32, num_vars=V, hidden=H)
    sel2 = jax.block_until_ready(sel2)
    probs2 = jax.block_until_ready(probs2)
    np.testing.assert_allclose(np.asarray(sel2), np.asarray(sel2_ref),
                               rtol=2e-3, atol=2e-3)
    np.testing.assert_allclose(np.asarray(probs2), np.asarray(probs2_ref),
                               rtol=2e-3, atol=2e-3)

    print("KERNEL_OK")
</pallas_src>

<mosaic_0001>
module attributes {stable_mosaic.version = 11 : i64} {
  func.func @_vsn_kernel(%arg0: i32, %arg1: memref<16x32xf32, #tpu.memory_space<vmem>>, %arg2: memref<16x16xf32, #tpu.memory_space<vmem>>, %arg3: memref<48x512xf32, #tpu.memory_space<vmem>>, %arg4: memref<1x512xf32, #tpu.memory_space<vmem>>, %arg5: memref<32x4xf32, #tpu.memory_space<vmem>>, %arg6: memref<1x4xf32, #tpu.memory_space<vmem>>, %arg7: memref<4x256xf32, #tpu.memory_space<vmem>>, %arg8: memref<1x256xf32, #tpu.memory_space<vmem>>, %arg9: memref<1x4xf32, #tpu.memory_space<vmem>>, %arg10: memref<1x4xf32, #tpu.memory_space<vmem>>, %arg11: memref<128x128xf32, #tpu.memory_space<vmem>>, %arg12: memref<1x128xf32, #tpu.memory_space<vmem>>, %arg13: memref<128x256xf32, #tpu.memory_space<vmem>>, %arg14: memref<1x256xf32, #tpu.memory_space<vmem>>, %arg15: memref<1x128xf32, #tpu.memory_space<vmem>>, %arg16: memref<1x128xf32, #tpu.memory_space<vmem>>, %arg17: memref<4x128xf32, #tpu.memory_space<vmem>>, %arg18: memref<128x128xf32, #tpu.memory_space<vmem>>, %arg19: memref<16x128xf32, #tpu.memory_space<vmem>>) attributes {dimension_semantics = [#tpu.dimension_semantics<parallel>], iteration_bounds = array<i64: 2>, scalar_prefetch = 0 : i64, scratch_operands = 0 : i64, tpu.core_type = #tpu.core_type<tc>, window_params = [{transform_indices = @transform_0, window_bounds = array<i64: 16, 32>}, {transform_indices = @transform_1, window_bounds = array<i64: 16, 16>}, {pipeline_mode = #tpu.pipeline_mode<synchronous>, transform_indices = @transform_2, window_bounds = array<i64: 48, 512>}, {pipeline_mode = #tpu.pipeline_mode<synchronous>, transform_indices = @transform_3, window_bounds = array<i64: 1, 512>}, {pipeline_mode = #tpu.pipeline_mode<synchronous>, transform_indices = @transform_4, window_bounds = array<i64: 32, 4>}, {pipeline_mode = #tpu.pipeline_mode<synchronous>, transform_indices = @transform_5, window_bounds = array<i64: 1, 4>}, {pipeline_mode = #tpu.pipeline_mode<synchronous>, transform_indices = @transform_6, window_bounds = array<i64: 4, 256>}, {pipeline_mode = #tpu.pipeline_mode<synchronous>, transform_indices = @transform_7, window_bounds = array<i64: 1, 256>}, {pipeline_mode = #tpu.pipeline_mode<synchronous>, transform_indices = @transform_8, window_bounds = array<i64: 1, 4>}, {pipeline_mode = #tpu.pipeline_mode<synchronous>, transform_indices = @transform_9, window_bounds = array<i64: 1, 4>}, {pipeline_mode = #tpu.pipeline_mode<synchronous>, transform_indices = @transform_10, window_bounds = array<i64: 128, 128>}, {pipeline_mode = #tpu.pipeline_mode<synchronous>, transform_indices = @transform_11, window_bounds = array<i64: 1, 128>}, {pipeline_mode = #tpu.pipeline_mode<synchronous>, transform_indices = @transform_12, window_bounds = array<i64: 128, 256>}, {pipeline_mode = #tpu.pipeline_mode<synchronous>, transform_indices = @transform_13, window_bounds = array<i64: 1, 256>}, {pipeline_mode = #tpu.pipeline_mode<synchronous>, transform_indices = @transform_14, window_bounds = array<i64: 1, 128>}, {pipeline_mode = #tpu.pipeline_mode<synchronous>, transform_indices = @transform_15, window_bounds = array<i64: 1, 128>}, {pipeline_mode = #tpu.pipeline_mode<synchronous>, transform_indices = @transform_16, window_bounds = array<i64: 4, 128>}, {pipeline_mode = #tpu.pipeline_mode<synchronous>, transform_indices = @transform_17, window_bounds = array<i64: 128, 128>}, {transform_indices = @transform_18, window_bounds = array<i64: 16, 128>}]} {
    %c0 = arith.constant 0 : index
    %c0_0 = arith.constant 0 : index
    %0 = vector.load %arg1[%c0, %c0_0] : memref<16x32xf32, #tpu.memory_space<vmem>>, vector<16x32xf32>
    %c0_1 = arith.constant 0 : index
    %c0_2 = arith.constant 0 : index
    %1 = vector.load %arg2[%c0_1, %c0_2] : memref<16x16xf32, #tpu.memory_space<vmem>>, vector<16x16xf32>
    %2 = tpu.concatenate %0, %1 in 1 : vector<16x32xf32>, vector<16x16xf32> -> vector<16x48xf32>
    %c0_3 = arith.constant 0 : index
    %c0_4 = arith.constant 0 : index
    %3 = vector.load %arg3[%c0_3, %c0_4] : memref<48x512xf32, #tpu.memory_space<vmem>>, vector<48x512xf32>
    %cst = arith.constant dense<0.000000e+00> : vector<16x512xf32>
    %4 = tpu.matmul %2, %3, %cst {dimension_numbers = #tpu.dot_dimension_numbers<[1], [0], [0], [1], [0, 0, 1, 1], [], []>} : vector<16x48xf32>, vector<48x512xf32>, vector<16x512xf32> -> vector<16x512xf32>
    %c0_5 = arith.constant 0 : index
    %c0_6 = arith.constant 0 : index
    %5 = vector.load %arg4[%c0_5, %c0_6] : memref<1x512xf32, #tpu.memory_space<vmem>>, vector<1x512xf32>
    %6 = vector.broadcast %5 : vector<1x512xf32> to vector<16x512xf32>
    %7 = arith.addf %4, %6 : vector<16x512xf32>
    %8 = vector.extract_strided_slice %7 {offsets = [0, 0], sizes = [16, 4], strides = [1, 1]} : vector<16x512xf32> to vector<16x4xf32>
    %9 = vector.extract_strided_slice %7 {offsets = [0, 128], sizes = [16, 256], strides = [1, 1]} : vector<16x512xf32> to vector<16x256xf32>
    %cst_7 = arith.constant 0.000000e+00 : f32
    %10 = vector.broadcast %cst_7 : f32 to vector<16x256xf32>
    %11 = arith.cmpf ogt, %9, %10 : vector<16x256xf32>
    %cst_8 = arith.constant 0.000000e+00 : f32
    %12 = vector.broadcast %cst_8 : f32 to vector<16x256xf32>
    %13 = arith.minimumf %9, %12 : vector<16x256xf32>
    %14 = math.exp %13 : vector<16x256xf32>
    %cst_9 = arith.constant 1.000000e+00 : f32
    %15 = vector.broadcast %cst_9 : f32 to vector<16x256xf32>
    %16 = arith.subf %14, %15 : vector<16x256xf32>
    %17 = arith.select %11, %9, %16 : vector<16x256xi1>, vector<16x256xf32>
    %18 = vector.extract_strided_slice %17 {offsets = [0, 0], sizes = [16, 32], strides = [1, 1]} : vector<16x256xf32> to vector<16x32xf32>
    %19 = vector.extract_strided_slice %17 {offsets = [0, 128], sizes = [16, 128], strides = [1, 1]} : vector<16x256xf32> to vector<16x128xf32>
    %20 = vector.extract_strided_slice %7 {offsets = [0, 384], sizes = [16, 128], strides = [1, 1]} : vector<16x512xf32> to vector<16x128xf32>
    %c0_10 = arith.constant 0 : index
    %c0_11 = arith.constant 0 : index
    %21 = vector.load %arg5[%c0_10, %c0_11] : memref<32x4xf32, #tpu.memory_space<vmem>>, vector<32x4xf32>
    %cst_12 = arith.constant dense<0.000000e+00> : vector<16x4xf32>
    %22 = tpu.matmul %18, %21, %cst_12 {dimension_numbers = #tpu.dot_dimension_numbers<[1], [0], [0], [1], [0, 0, 1, 1], [], []>} : vector<16x32xf32>, vector<32x4xf32>, vector<16x4xf32> -> vector<16x4xf32>
    %c0_13 = arith.constant 0 : index
    %c0_14 = arith.constant 0 : index
    %23 = vector.load %arg6[%c0_13, %c0_14] : memref<1x4xf32, #tpu.memory_space<vmem>>, vector<1x4xf32>
    %24 = vector.broadcast %23 : vector<1x4xf32> to vector<16x4xf32>
    %25 = arith.addf %22, %24 : vector<16x4xf32>
    %c0_15 = arith.constant 0 : index
    %c0_16 = arith.constant 0 : index
    %26 = vector.load %arg7[%c0_15, %c0_16] : memref<4x256xf32, #tpu.memory_space<vmem>>, vector<4x256xf32>
    %cst_17 = arith.constant dense<0.000000e+00> : vector<16x256xf32>
    %27 = tpu.matmul %25, %26, %cst_17 {dimension_numbers = #tpu.dot_dimension_numbers<[1], [0], [0], [1], [0, 0, 1, 1], [], []>} : vector<16x4xf32>, vector<4x256xf32>, vector<16x256xf32> -> vector<16x256xf32>
    %c0_18 = arith.constant 0 : index
    %c0_19 = arith.constant 0 : index
    %28 = vector.load %arg8[%c0_18, %c0_19] : memref<1x256xf32, #tpu.memory_space<vmem>>, vector<1x256xf32>
    %29 = vector.broadcast %28 : vector<1x256xf32> to vector<16x256xf32>
    %30 = arith.addf %27, %29 : vector<16x256xf32>
    %31 = vector.extract_strided_slice %30 {offsets = [0, 0], sizes = [16, 4], strides = [1, 1]} : vector<16x256xf32> to vector<16x4xf32>
    %cst_20 = arith.constant 0.000000e+00 : f32
    %32 = vector.broadcast %cst_20 : f32 to vector<16x4xf32>
    %33 = arith.subf %32, %31 : vector<16x4xf32>
    %34 = math.exp %33 : vector<16x4xf32>
    %cst_21 = arith.constant 1.000000e+00 : f32
    %35 = vector.broadcast %cst_21 : f32 to vector<16x4xf32>
    %36 = arith.addf %35, %34 : vector<16x4xf32>
    %cst_22 = arith.constant 1.000000e+00 : f32
    %37 = vector.broadcast %cst_22 : f32 to vector<16x4xf32>
    %38 = arith.divf %37, %36 : vector<16x4xf32>
    %39 = vector.extract_strided_slice %30 {offsets = [0, 128], sizes = [16, 4], strides = [1, 1]} : vector<16x256xf32> to vector<16x4xf32>
    %40 = arith.mulf %38, %39 : vector<16x4xf32>
    %41 = arith.addf %40, %8 : vector<16x4xf32>
    %c0_23 = arith.constant 0 : index
    %c0_24 = arith.constant 0 : index
    %42 = vector.load %arg9[%c0_23, %c0_24] : memref<1x4xf32, #tpu.memory_space<vmem>>, vector<1x4xf32>
    %43 = vector.broadcast %42 : vector<1x4xf32> to vector<16x4xf32>
    %44 = arith.mulf %41, %43 : vector<16x4xf32>
    %c0_25 = arith.constant 0 : index
    %c0_26 = arith.constant 0 : index
    %45 = vector.load %arg10[%c0_25, %c0_26] : memref<1x4xf32, #tpu.memory_space<vmem>>, vector<1x4xf32>
    %46 = vector.broadcast %45 : vector<1x4xf32> to vector<16x4xf32>
    %47 = arith.addf %44, %46 : vector<16x4xf32>
    %cst_27 = arith.constant dense<0xFF800000> : vector<16xf32>
    %48 = vector.multi_reduction <maximumf>, %47, %cst_27 [1] : vector<16x4xf32> to vector<16xf32>
    %49 = vector.shape_cast %48 : vector<16xf32> to vector<16x1xf32>
    %50 = vector.broadcast %49 : vector<16x1xf32> to vector<16x4xf32>
    %51 = arith.subf %47, %50 : vector<16x4xf32>
    %52 = math.exp %51 : vector<16x4xf32>
    %cst_28 = arith.constant dense<0.000000e+00> : vector<16xf32>
    %53 = vector.multi_reduction <add>, %52, %cst_28 [1] : vector<16x4xf32> to vector<16xf32>
    %54 = vector.shape_cast %53 : vector<16xf32> to vector<16x1xf32>
    %55 = tpu.reciprocal %54 {approx = true} : vector<16x1xf32> -> vector<16x1xf32>
    %56 = vector.broadcast %55 : vector<16x1xf32> to vector<16x4xf32>
    %57 = arith.mulf %52, %56 : vector<16x4xf32>
    %c0_29 = arith.constant 0 : index
    %c0_30 = arith.constant 0 : index
    %58 = vector.load %arg11[%c0_29, %c0_30] : memref<128x128xf32, #tpu.memory_space<vmem>>, vector<128x128xf32>
    %cst_31 = arith.constant dense<0.000000e+00> : vector<16x128xf32>
    %59 = tpu.matmul %19, %58, %cst_31 {dimension_numbers = #tpu.dot_dimension_numbers<[1], [0], [0], [1], [0, 0, 1, 1], [], []>} : vector<16x128xf32>, vector<128x128xf32>, vector<16x128xf32> -> vector<16x128xf32>
    %c0_32 = arith.constant 0 : index
    %c0_33 = arith.constant 0 : index
    %60 = vector.load %arg12[%c0_32, %c0_33] : memref<1x128xf32, #tpu.memory_space<vmem>>, vector<1x128xf32>
    %61 = vector.broadcast %60 : vector<1x128xf32> to vector<16x128xf32>
    %62 = arith.addf %59, %61 : vector<16x128xf32>
    %c0_34 = arith.constant 0 : index
    %c0_35 = arith.constant 0 : index
    %63 = vector.load %arg13[%c0_34, %c0_35] : memref<128x256xf32, #tpu.memory_space<vmem>>, vector<128x256xf32>
    %cst_36 = arith.constant dense<0.000000e+00> : vector<16x256xf32>
    %64 = tpu.matmul %62, %63, %cst_36 {dimension_numbers = #tpu.dot_dimension_numbers<[1], [0], [0], [1], [0, 0, 1, 1], [], []>} : vector<16x128xf32>, vector<128x256xf32>, vector<16x256xf32> -> vector<16x256xf32>
    %c0_37 = arith.constant 0 : index
    %c0_38 = arith.constant 0 : index
    %65 = vector.load %arg14[%c0_37, %c0_38] : memref<1x256xf32, #tpu.memory_space<vmem>>, vector<1x256xf32>
    %66 = vector.broadcast %65 : vector<1x256xf32> to vector<16x256xf32>
    %67 = arith.addf %64, %66 : vector<16x256xf32>
    %68 = vector.extract_strided_slice %67 {offsets = [0, 0], sizes = [16, 128], strides = [1, 1]} : vector<16x256xf32> to vector<16x128xf32>
    %cst_39 = arith.constant 0.000000e+00 : f32
    %69 = vector.broadcast %cst_39 : f32 to vector<16x128xf32>
    %70 = arith.subf %69, %68 : vector<16x128xf32>
    %71 = math.exp %70 : vector<16x128xf32>
    %cst_40 = arith.constant 1.000000e+00 : f32
    %72 = vector.broadcast %cst_40 : f32 to vector<16x128xf32>
    %73 = arith.addf %72, %71 : vector<16x128xf32>
    %cst_41 = arith.constant 1.000000e+00 : f32
    %74 = vector.broadcast %cst_41 : f32 to vector<16x128xf32>
    %75 = arith.divf %74, %73 : vector<16x128xf32>
    %76 = vector.extract_strided_slice %67 {offsets = [0, 128], sizes = [16, 128], strides = [1, 1]} : vector<16x256xf32> to vector<16x128xf32>
    %77 = arith.mulf %75, %76 : vector<16x128xf32>
    %78 = arith.addf %77, %20 : vector<16x128xf32>
    %c0_42 = arith.constant 0 : index
    %c0_43 = arith.constant 0 : index
    %79 = vector.load %arg15[%c0_42, %c0_43] : memref<1x128xf32, #tpu.memory_space<vmem>>, vector<1x128xf32>
    %80 = vector.broadcast %79 : vector<1x128xf32> to vector<16x128xf32>
    %81 = arith.mulf %78, %80 : vector<16x128xf32>
    %c0_44 = arith.constant 0 : index
    %c0_45 = arith.constant 0 : index
    %82 = vector.load %arg16[%c0_44, %c0_45] : memref<1x128xf32, #tpu.memory_space<vmem>>, vector<1x128xf32>
    %83 = vector.broadcast %82 : vector<1x128xf32> to vector<16x128xf32>
    %84 = arith.addf %81, %83 : vector<16x128xf32>
    %c0_46 = arith.constant 0 : index
    %c0_47 = arith.constant 0 : index
    %85 = vector.load %arg17[%c0_46, %c0_47] : memref<4x128xf32, #tpu.memory_space<vmem>>, vector<4x128xf32>
    %cst_48 = arith.constant dense<0.000000e+00> : vector<16x128xf32>
    %86 = tpu.matmul %57, %85, %cst_48 {dimension_numbers = #tpu.dot_dimension_numbers<[1], [0], [0], [1], [0, 0, 1, 1], [], []>} : vector<16x4xf32>, vector<4x128xf32>, vector<16x128xf32> -> vector<16x128xf32>
    %87 = arith.mulf %84, %86 : vector<16x128xf32>
    %c0_49 = arith.constant 0 : index
    %c0_50 = arith.constant 0 : index
    %88 = vector.load %arg18[%c0_49, %c0_50] : memref<128x128xf32, #tpu.memory_space<vmem>>, vector<128x128xf32>
    %cst_51 = arith.constant dense<0.000000e+00> : vector<16x128xf32>
    %89 = tpu.matmul %87, %88, %cst_51 {dimension_numbers = #tpu.dot_dimension_numbers<[1], [0], [0], [1], [0, 0, 1, 1], [], []>} : vector<16x128xf32>, vector<128x128xf32>, vector<16x128xf32> -> vector<16x128xf32>
    %cst_52 = arith.constant 0.000000e+00 : f32
    %90 = vector.broadcast %cst_52 : f32 to vector<16x32xf32>
    %cst_53 = arith.constant 0.000000e+00 : f32
    %91 = vector.broadcast %cst_53 : f32 to vector<16x92xf32>
    %92 = tpu.concatenate %90, %57, %91 in 1 : vector<16x32xf32>, vector<16x4xf32>, vector<16x92xf32> -> vector<16x128xf32>
    %93 = arith.addf %89, %92 : vector<16x128xf32>
    %c0_54 = arith.constant 0 : index
    %c0_55 = arith.constant 0 : index
    %94 = vector.load %arg19[%c0_54, %c0_55] : memref<16x128xf32, #tpu.memory_space<vmem>>, vector<16x128xf32>
    tpu.vector_store %arg19[%c0_54, %c0_55], %93 {strides = array<i32>} : memref<16x128xf32, #tpu.memory_space<vmem>>, vector<16x128xf32>,
    return
  }
  func.func @transform_0(%arg0: i32) -> (i32, i32) {
    %c0_i32 = arith.constant 0 : i32
    %c0_i32_0 = arith.constant 0 : i32
    return %arg0, %c0_i32 : i32, i32
  }
  func.func @transform_1(%arg0: i32) -> (i32, i32) {
    %c0_i32 = arith.constant 0 : i32
    %c0_i32_0 = arith.constant 0 : i32
    return %arg0, %c0_i32 : i32, i32
  }
  func.func @transform_2(%arg0: i32) -> (i32, i32) {
    %c0_i32 = arith.constant 0 : i32
    %c0_i32_0 = arith.constant 0 : i32
    %c0_i32_1 = arith.constant 0 : i32
    return %c0_i32, %c0_i32_0 : i32, i32
  }
  func.func @transform_3(%arg0: i32) -> (i32, i32) {
    %c0_i32 = arith.constant 0 : i32
    %c0_i32_0 = arith.constant 0 : i32
    %c0_i32_1 = arith.constant 0 : i32
    return %c0_i32, %c0_i32_0 : i32, i32
  }
  func.func @transform_4(%arg0: i32) -> (i32, i32) {
    %c0_i32 = arith.constant 0 : i32
    %c0_i32_0 = arith.constant 0 : i32
    %c0_i32_1 = arith.constant 0 : i32
    return %c0_i32, %c0_i32_0 : i32, i32
  }
  func.func @transform_5(%arg0: i32) -> (i32, i32) {
    %c0_i32 = arith.constant 0 : i32
    %c0_i32_0 = arith.constant 0 : i32
    %c0_i32_1 = arith.constant 0 : i32
    return %c0_i32, %c0_i32_0 : i32, i32
  }
  func.func @transform_6(%arg0: i32) -> (i32, i32) {
    %c0_i32 = arith.constant 0 : i32
    %c0_i32_0 = arith.constant 0 : i32
    %c0_i32_1 = arith.constant 0 : i32
    return %c0_i32, %c0_i32_0 : i32, i32
  }
  func.func @transform_7(%arg0: i32) -> (i32, i32) {
    %c0_i32 = arith.constant 0 : i32
    %c0_i32_0 = arith.constant 0 : i32
    %c0_i32_1 = arith.constant 0 : i32
    return %c0_i32, %c0_i32_0 : i32, i32
  }
  func.func @transform_8(%arg0: i32) -> (i32, i32) {
    %c0_i32 = arith.constant 0 : i32
    %c0_i32_0 = arith.constant 0 : i32
    %c0_i32_1 = arith.constant 0 : i32
    return %c0_i32, %c0_i32_0 : i32, i32
  }
  func.func @transform_9(%arg0: i32) -> (i32, i32) {
    %c0_i32 = arith.constant 0 : i32
    %c0_i32_0 = arith.constant 0 : i32
    %c0_i32_1 = arith.constant 0 : i32
    return %c0_i32, %c0_i32_0 : i32, i32
  }
  func.func @transform_10(%arg0: i32) -> (i32, i32) {
    %c0_i32 = arith.constant 0 : i32
    %c0_i32_0 = arith.constant 0 : i32
    %c0_i32_1 = arith.constant 0 : i32
    return %c0_i32, %c0_i32_0 : i32, i32
  }
  func.func @transform_11(%arg0: i32) -> (i32, i32) {
    %c0_i32 = arith.constant 0 : i32
    %c0_i32_0 = arith.constant 0 : i32
    %c0_i32_1 = arith.constant 0 : i32
    return %c0_i32, %c0_i32_0 : i32, i32
  }
  func.func @transform_12(%arg0: i32) -> (i32, i32) {
    %c0_i32 = arith.constant 0 : i32
    %c0_i32_0 = arith.constant 0 : i32
    %c0_i32_1 = arith.constant 0 : i32
    return %c0_i32, %c0_i32_0 : i32, i32
  }
  func.func @transform_13(%arg0: i32) -> (i32, i32) {
    %c0_i32 = arith.constant 0 : i32
    %c0_i32_0 = arith.constant 0 : i32
    %c0_i32_1 = arith.constant 0 : i32
    return %c0_i32, %c0_i32_0 : i32, i32
  }
  func.func @transform_14(%arg0: i32) -> (i32, i32) {
    %c0_i32 = arith.constant 0 : i32
    %c0_i32_0 = arith.constant 0 : i32
    %c0_i32_1 = arith.constant 0 : i32
    return %c0_i32, %c0_i32_0 : i32, i32
  }
  func.func @transform_15(%arg0: i32) -> (i32, i32) {
    %c0_i32 = arith.constant 0 : i32
    %c0_i32_0 = arith.constant 0 : i32
    %c0_i32_1 = arith.constant 0 : i32
    return %c0_i32, %c0_i32_0 : i32, i32
  }
  func.func @transform_16(%arg0: i32) -> (i32, i32) {
    %c0_i32 = arith.constant 0 : i32
    %c0_i32_0 = arith.constant 0 : i32
    %c0_i32_1 = arith.constant 0 : i32
    return %c0_i32, %c0_i32_0 : i32, i32
  }
  func.func @transform_17(%arg0: i32) -> (i32, i32) {
    %c0_i32 = arith.constant 0 : i32
    %c0_i32_0 = arith.constant 0 : i32
    %c0_i32_1 = arith.constant 0 : i32
    return %c0_i32, %c0_i32_0 : i32, i32
  }
  func.func @transform_18(%arg0: i32) -> (i32, i32) {
    %c0_i32 = arith.constant 0 : i32
    %c0_i32_0 = arith.constant 0 : i32
    return %arg0, %c0_i32 : i32, i32
  }
}

</mosaic_0001>

<bundles_post_ra>
// kernel: vsn_forward.1
= control target key start
LH: loop header
LB: loop body
LE: loop exit
PB: predicated region body
PF: predicated region fallthrough
CT: control target
= control target key end

     0   :  { %s2909_s0 = inlined_call_operand.vmem [shape: f32[32,32], index: 0, kind: input, shape index: {}]   ;;  %s2910_s1 = inlined_call_operand.hbm [shape: f32[32,16], index: 1, kind: input, shape index: {}]   ;;  %s2911_s2 = inlined_call_operand.hbm [shape: f32[48,512], index: 2, kind: input, shape index: {}]   ;;  %s2912_s3 = inlined_call_operand.vmem [shape: f32[1,512], index: 3, kind: input, shape index: {}]   ;;  %s2913_s4 = inlined_call_operand.vmem [shape: f32[32,4], index: 4, kind: input, shape index: {}]   ;;  %s2914_s5 = inlined_call_operand.vmem [shape: f32[1,4], index: 5, kind: input, shape index: {}]   ;;  %s2915_s6 = inlined_call_operand.vmem [shape: f32[4,256], index: 6, kind: input, shape index: {}]   ;;  %s2916_s7 = inlined_call_operand.vmem [shape: f32[1,256], index: 7, kind: input, shape index: {}]   ;;  %s2917_s8 = inlined_call_operand.hbm [shape: f32[1,4], index: 8, kind: input, shape index: {}]   ;;  %s2918_s9 = inlined_call_operand.vmem [shape: f32[1,4], index: 9, kind: input, shape index: {}]   ;;  %s2919_s10 = inlined_call_operand.hbm [shape: f32[128,128], index: 10, kind: input, shape index: {}]   ;;  %s2920_s11 = inlined_call_operand.vmem [shape: f32[1,128], index: 11, kind: input, shape index: {}]   ;;  %s2921_s12 = inlined_call_operand.hbm [shape: f32[128,256], index: 12, kind: input, shape index: {}]   ;;  %s2922_s13 = inlined_call_operand.vmem [shape: f32[1,256], index: 13, kind: input, shape index: {}]   ;;  %s2923_s14 = inlined_call_operand.vmem [shape: f32[1,128], index: 14, kind: input, shape index: {}]   ;;  %s2924_s15 = inlined_call_operand.vmem [shape: f32[1,128], index: 15, kind: input, shape index: {}]   ;;  %s2925_s16 = inlined_call_operand.vmem [shape: f32[4,128], index: 16, kind: input, shape index: {}]   ;;  %s2926_s17 = inlined_call_operand.hbm [shape: f32[128,128], index: 17, kind: input, shape index: {}]   ;;  %s2927_s18 = inlined_call_operand.vmem [shape: f32[32,128], index: 18, kind: output, shape index: {}]  }
   0x1   :  { %2938 = sst [smem:[#allocation16_spill]] %s2909_s0 }
   0x2   :  { %2939 = sst [smem:[#allocation17_spill]] %s2910_s1 }
   0x3   :  { %2940 = sst [smem:[#allocation18_spill]] %s2911_s2 }
   0x4   :  { %2941 = sst [smem:[#allocation19_spill]] %s2916_s7 }
   0x5   :  { %2942 = sst [smem:[#allocation20_spill]] %s2918_s9 }
   0x6   :  { %2943 = sst [smem:[#allocation21_spill]] %s2920_s11 }
   0x7   :  { %2944 = sst [smem:[#allocation22_spill]] %s2922_s13 }
   0x8   :  { %2945 = sst [smem:[#allocation23_spill]] %s2923_s14 }
   0x9   :  { %2946 = sst [smem:[#allocation24_spill]] %s2924_s15 }
   0xa   :  { %2947 = sst [smem:[#allocation25_spill]] %s2925_s16 }
   0xb   :  { %2948 = sst [smem:[#allocation26_spill]] %s2927_s18 }
   0xc   :  { %23 = vsyncpa [#allocation3], 0 }
   0xd   :  { %25 = vsyncpa [#allocation3 + $0x1], 0 }
   0xe   :  { %26 = vsyncpa [#allocation5], 0 }
   0xf   :  { %27 = vsyncpa [#allocation8], 0 }
  0x10   :  { %28 = vsyncpa [#allocation11], 0  ;;  %s2526_s27 = smov 0   ;;  %s2528_s28 = smov 0  }
  0x11   :  { %s2530_s29 = smov 0   ;;  %s2532_s30 = smov 0  }
  0x12 LB: > { %s2417_s0 = smov [#allocation4]   ;;  %s2930_s1 = sadd.s32 4294967295, %s2415_s30   ;;  %s2415_s30 = sphi %s2532_s30, %s2975_s30   ;;  %s2411_s29 = sphi %s2530_s29, %s2974_s29   ;;  %s2407_s28 = sphi %s2528_s28, %s2973_s28   ;;  %s2403_s27 = sphi %s2526_s27, %s2972_s27  }
  0x13   : > { %s465_s19 = sshll.u32 %s2417_s0, 4  ;;  %p1762_p0 = scmp.ge.s32.totalorder %s2415_s30, 1  ;;  %s2555_s19 = int_to_ptr.vmem [resolvable:$true] %s465_s19 }
  0x14   : > { %p2550_p1 = scmp.eq.s32.totalorder %s2930_s1, 0  ;;  %p453_p2 = scmp.lt.s32.totalorder %s2415_s30, 3 }
  0x15   : > { %s2418_s22 = smov [#allocation7]   ;;  %s2419_s24 = smov [#allocation6]  }
  0x16   : > { %s2949_s20 = scalar_select %p2550_p1, 1, 0 }
  0x17   : > { %p2557_p3 = pnand %p1762_p0, %p453_p2  ;;  %s507_s2 = sshll.u32 %s2418_s22, 4  ;;  %s2569_s2 = int_to_ptr.vmem [resolvable:$true] %s507_s2 }
  0x18   : > { %s2571_s25 = sshll.u32 %s2419_s24, 4  ;;  %s2952_s1 = sld [smem:[#allocation18_spill]]  ;;  %s495_s25 = int_to_ptr.vmem [resolvable:$true] %s2571_s25 }
  0x19   : > { %s2950_s21 = scalar_select %p2557_p3, 1, 0 }
  0x1a   : > { %p2090_p4 = pneg %p2557_p3 }
  0x1c   : > { %p2565_p5 = pnand %p2090_p4, %p2550_p1 }
  0x1e   : > { %s2199_s18 = scalar_lea.hbm %s2952_s1, 3072  ;;  %p2581_p7 = pneg %p2565_p5 }
  0x1f   : > { %p2200_p6 = scmp.ne.s32.totalorder %s2952_s1, %s2199_s18  ;;  %p2206_p10 = scmp.lt.u32.totalorder %s2199_s18, %s2952_s1 }
  0x21   : > { %p2202_p8 = pnand %p2581_p7, %p2200_p6 }
  0x23   : > { %p2203_p9 = pneg %p2202_p8 }
  0x25   : > { %p2208_p11 = pnand %p2206_p10, %p2203_p9 }
  0x27   : > { %2211 = shalt.err (!%p2208_p11)
}
  0x28   : > { %s2212_s14 = scalar_lea.vmem %s2555_s19, 3072  ;;  %p2220_p2 = scmp.lt.s32.totalorder %s2555_s19, %s2555_s19 }
  0x29   : > { %p2213_p12 = scmp.ne.s32.totalorder %s2555_s19, %s2212_s14  ;;  %p2221_p4 = scmp.lt.s32.totalorder %s2212_s14, %s2212_s14 }
  0x2b   : > { %p2215_p13 = pnand %p2213_p12, %p2581_p7  ;;  %p2222_p6 = por %p2221_p4, %p2220_p2 }
  0x2d   : > { %p2216_p0 = pneg %p2215_p13 }
  0x2f   : > { %p2223_p8 = pnand %p2222_p6, %p2216_p0 }
  0x31   : > { %2226 = shalt.err (!%p2223_p8)
}
  0x32   : > { %s2420_s15 = smov 512   ;;  %s2421_s16 = smov 32  }
  0x33   : > { %2093 = dma.hbm_to_vmem [thread:$0]  (!%p2565_p5), %s2952_s1, 3072, %s2555_s19, [#allocation5], %s2420_s15, %s2420_s15, %s2421_s16  }
  0x34   : > { %s2227_s9 = scalar_lea.hbm %s2919_s10, 2048 }
  0x35   : > { %p2228_p9 = scmp.ne.s32.totalorder %s2919_s10, %s2227_s9  ;;  %p2234_p12 = scmp.lt.u32.totalorder %s2227_s9, %s2919_s10 }
  0x37   : > { %p2230_p10 = pnand %p2228_p9, %p2581_p7 }
  0x39   : > { %p2231_p11 = pneg %p2230_p10 }
  0x3b   : > { %p2236_p13 = pnand %p2234_p12, %p2231_p11 }
  0x3d   : > { %2239 = shalt.err (!%p2236_p13)
}
  0x3e   : > { %s2240_s19 = scalar_lea.vmem %s2569_s2, 2048  ;;  %p2248_p6 = scmp.lt.s32.totalorder %s2569_s2, %s2569_s2 }
  0x3f   : > { %p2241_p0 = scmp.ne.s32.totalorder %s2569_s2, %s2240_s19  ;;  %p2249_p8 = scmp.lt.s32.totalorder %s2240_s19, %s2240_s19 }
  0x41   : > { %p2243_p2 = pnand %p2241_p0, %p2581_p7  ;;  %p2250_p9 = por %p2249_p8, %p2248_p6 }
  0x43   : > { %p2244_p4 = pneg %p2243_p2 }
  0x45   : > { %p2251_p10 = pnand %p2250_p9, %p2244_p4 }
  0x47   : > { %2254 = shalt.err (!%p2251_p10)
}
  0x48   : > { %s2934_s7 = smov 128   ;;  %s2936_s9 = smov 8  }
  0x49   : > { %2099 = dma.hbm_to_vmem [thread:$0]  (!%p2565_p5), %s2919_s10, 2048, %s2569_s2, [#allocation8], %s2934_s7, %s2934_s7, %s2936_s9  }
  0x4a   : > { %s2255_s18 = scalar_lea.hbm %s2917_s8, 16 }
  0x4b   : > { %p2256_p11 = scmp.ne.s32.totalorder %s2917_s8, %s2255_s18  ;;  %p2262_p0 = scmp.lt.u32.totalorder %s2255_s18, %s2917_s8 }
  0x4d   : > { %p2258_p12 = pnand %p2256_p11, %p2581_p7 }
  0x4f   : > { %p2259_p13 = pneg %p2258_p12 }
  0x51   : > { %p2264_p2 = pnand %p2262_p0, %p2259_p13 }
  0x53   : > { %2267 = shalt.err (!%p2264_p2)
}
  0x54   : > { %s2268_s19 = scalar_lea.vmem %s495_s25, 16  ;;  %s2275_s2 = scalar_lea.vmem %s495_s25, 32 }
  0x55   : > { %p2269_p4 = scmp.ne.s32.totalorder %s495_s25, %s2268_s19  ;;  %p2276_p9 = scmp.lt.s32.totalorder %s495_s25, %s495_s25 }
  0x56   : > { %p2277_p10 = scmp.lt.s32.totalorder %s2275_s2, %s2268_s19 }
  0x57   : > { %p2271_p6 = pnand %p2269_p4, %p2581_p7 }
  0x58   : > { %p2278_p3 = por %p2277_p10, %p2276_p9 }
  0x59   : > { %p2272_p8 = pneg %p2271_p6 }
  0x5b   : > { %p2279_p1 = pnand %p2278_p3, %p2272_p8 }
  0x5d   : > { %2282 = shalt.err (!%p2279_p1)
}
  0x5e   : > { %2096 = dma.hbm_to_vmem [thread:$0]  (!%p2565_p5), %s2917_s8, 16, %s495_s25, [#allocation5]  }
  0x5f   : > { %s2424_s15 = smov [#allocation9]   ;;  %s2283_s0 = scalar_lea.hbm %s2921_s12, 4096 }
  0x60   : > { %s523_s16 = sshll.u32 %s2424_s15, 4  ;;  %p2284_p11 = scmp.ne.s32.totalorder %s2921_s12, %s2283_s0  ;;  %s524_s16 = int_to_ptr.vmem [resolvable:$true] %s523_s16 }
  0x61   : > { %p2290_p12 = scmp.lt.u32.totalorder %s2283_s0, %s2921_s12 }
  0x62   : > { %p2286_p1 = pnand %p2284_p11, %p2581_p7 }
  0x64   : > { %p2287_p3 = pneg %p2286_p1 }
  0x66   : > { %p2292_p13 = pnand %p2290_p12, %p2287_p3 }
  0x68   : > { %2295 = shalt.err (!%p2292_p13)
}
  0x69   : > { %s2296_s25 = scalar_lea.vmem %s524_s16, 4096  ;;  %p2304_p6 = scmp.lt.s32.totalorder %s524_s16, %s524_s16 }
  0x6a   : > { %p2297_p0 = scmp.ne.s32.totalorder %s524_s16, %s2296_s25  ;;  %p2305_p8 = scmp.lt.s32.totalorder %s2296_s25, %s2296_s25 }
  0x6c   : > { %p2299_p2 = pnand %p2297_p0, %p2581_p7  ;;  %p2306_p9 = por %p2305_p8, %p2304_p6 }
  0x6e   : > { %p2300_p4 = pneg %p2299_p2 }
  0x70   : > { %p2307_p10 = pnand %p2306_p9, %p2300_p4 }
  0x72   : > { %2310 = shalt.err (!%p2307_p10)
}
  0x73   : > { %s2425_s11 = smov 256   ;;  %s2426_s13 = smov 16  }
  0x74   : > { %2102 = dma.hbm_to_vmem [thread:$0]  (!%p2565_p5), %s2921_s12, 4096, %s524_s16, [#allocation8], %s2425_s11, %s2425_s11, %s2426_s13  }
  0x75   : > { %s2427_s26 = smov [#allocation10]   ;;  %s2311_s19 = scalar_lea.hbm %s2926_s17, 2048 }
  0x76   : > { %s548_s0 = sshll.u32 %s2427_s26, 4  ;;  %p2312_p11 = scmp.ne.s32.totalorder %s2926_s17, %s2311_s19  ;;  %s549_s0 = int_to_ptr.vmem [resolvable:$true] %s548_s0 }
  0x77   : > { %p2318_p12 = scmp.lt.u32.totalorder %s2311_s19, %s2926_s17 }
  0x78   : > { %p2314_p1 = pnand %p2312_p11, %p2581_p7 }
  0x7a   : > { %p2315_p3 = pneg %p2314_p1 }
  0x7c   : > { %p2320_p13 = pnand %p2318_p12, %p2315_p3 }
  0x7e   : > { %2323 = shalt.err (!%p2320_p13)
}
  0x7f   : > { %s2324_s16 = scalar_lea.vmem %s549_s0, 2048  ;;  %p2332_p6 = scmp.lt.s32.totalorder %s549_s0, %s549_s0 }
  0x80   : > { %p2325_p0 = scmp.ne.s32.totalorder %s549_s0, %s2324_s16  ;;  %p2333_p8 = scmp.lt.s32.totalorder %s2324_s16, %s2324_s16 }
  0x82   : > { %p2327_p2 = pnand %p2325_p0, %p2581_p7  ;;  %p2334_p9 = por %p2333_p8, %p2332_p6 }
  0x84   : > { %p2328_p4 = pneg %p2327_p2 }
  0x86   : > { %p2335_p10 = pnand %p2334_p9, %p2328_p4 }
  0x88   : > { %2338 = shalt.err (!%p2335_p10)
}
  0x89   : > { %s2954_s11 = smov 8   ;;  %s2955_s13 = smov 128  }
  0x8a   : > { %2105 = dma.hbm_to_vmem [thread:$0]  (!%p2565_p5), %s2926_s17, 2048, %s549_s0, [#allocation11], %s2955_s13, %s2955_s13, %s2954_s11  }
  0x8b   : > { %s2687_s23 = sadd.s32 1, %s2415_s30   ;;  %s67_s15 = sadd.s32 1, %s2411_s29 }
  0x8c   : > { %s64_s22 = ssub.s32 %s2415_s30, %s2687_s23  ;;  %p74_p11 = scmp.ne.s32.totalorder %s2411_s29, %s2407_s28 }
  0x8d   : > { %p65_p7 = scmp.eq.s32.totalorder %s64_s22, 0  ;;  %p75_p1 = scmp.eq.s32.totalorder %s2415_s30, 0 }
  0x8e   : > { %p80_p3 = scmp.ne.s32.totalorder %s2407_s28, %s2403_s27  ;;  %p2956_p13 = scmp.ne.s32.totalorder %s2949_s20, 0 }
  0x8f   : > { %s2698_s18 = scalar_select %p65_p7, %s2411_s29, %s67_s15  }
  0x90   : > { %p76_p12 = por %p75_p1, %p74_p11  ;;  %p2702_p0 = por %p2956_p13, %p80_p3 }
  0x91   : > { %p2115_p2 = scmp.lt.s32.totalorder %s2415_s30, 2  ;;  %s571_s24 = sand.u32 1, %s2411_s29  }
  0x92   : > { %s1769_s0 = sshll.u32 %s571_s24, 4  ;;  %s1808_s14 = sshll.u32 %s2415_s30, 8 }
  0x93   : > { %s2958_s25 = sld [smem:[#allocation17_spill]]  ;;  %s575_s27 = scalar_lea.vmem [#allocation2], %s1769_s0 }
  0x94   : > { %s582_s7 = sshll.u32 %s575_s27, 4  ;;  %p2716_p5 = pnand %p2115_p2, %p76_p12  ;;  %s2714_s7 = int_to_ptr.vmem [resolvable:$true] %s582_s7 }
  0x95   : > { %s2720_s22 = scalar_lea.sflag [#allocation3], %s571_s24 }
  0x96   : > { %p2341_p6 = pneg %p2716_p5 }
  0x99   : > { %s2712_s16 = scalar_lea.hbm %s2958_s25, %s1808_s14  ;;  %s2344_s19 = scalar_lea.hbm %s2958_s25, 512 }
  0x9a   : > { %s2339_s15 = scalar_lea.hbm %s2712_s16, 256  ;;  %p2345_p10 = scmp.lt.u32.totalorder %s2712_s16, %s2958_s25 }
  0x9b   : > { %p2340_p4 = scmp.ne.s32.totalorder %s2712_s16, %s2339_s15  ;;  %p2346_p7 = scmp.lt.u32.totalorder %s2344_s19, %s2339_s15 }
  0x9c   : > { %p2348_p1 = scmp.lt.u32.totalorder %s2339_s15, %s2712_s16 }
  0x9d   : > { %p2342_p8 = pnand %p2341_p6, %p2340_p4  ;;  %p2347_p11 = por %p2346_p7, %p2345_p10 }
  0x9f   : > { %p2343_p9 = pneg %p2342_p8  ;;  %p2349_p3 = por %p2348_p1, %p2347_p11 }
  0xa1   : > { %p2350_p12 = pnand %p2349_p3, %p2343_p9 }
  0xa3   : > { %2353 = shalt.err (!%p2350_p12)
}
  0xa4   : > { %s2354_s24 = scalar_lea.vmem %s2714_s7, 256  ;;  %s2428_s0 = smov [#allocation2]  }
  0xa5   : > { %p2355_p13 = scmp.ne.s32.totalorder %s2714_s7, %s2354_s24  ;;  %s2359_s14 = sshll.u32 %s2428_s0, 4  ;;  %s2360_s14 = int_to_ptr.vmem [resolvable:$false] %s2359_s14 }
  0xa6   : > { %s2361_s2 = scalar_lea.vmem %s2360_s14, 512  ;;  %p2362_p8 = scmp.lt.s32.totalorder %s2714_s7, %s2360_s14 }
  0xa7   : > { %p2357_p2 = pnand %p2355_p13, %p2341_p6  ;;  %p2363_p10 = scmp.lt.s32.totalorder %s2361_s2, %s2354_s24 }
  0xa9   : > { %p2358_p4 = pneg %p2357_p2  ;;  %p2364_p7 = por %p2363_p10, %p2362_p8 }
  0xab   : > { %p2365_p11 = pnand %p2364_p7, %p2358_p4 }
  0xad   : > { %2368 = shalt.err (!%p2365_p11)
}
  0xae   : > { %2109 = dma.hbm_to_vmem [thread:$0]  (!%p2716_p5), %s2712_s16, 256, %s2714_s7, %s2720_s22, %s2955_s13, %s2955_s13, %s2954_s11  }
  0xaf   : > { %p2960_p6 = scmp.ne.s32.totalorder %s2950_s21, 0 }
  0xb0   : > { %s596_s15 = sand.u32 (!%p2960_p6), 1, %s2407_s28  }
  0xb1   : > { %594 = sbr.rel (%p2960_p6) target bundleno = 1762 (0x6e2), region = 92  ;;  %s1773_s19 = sshll.u32 (!%p2960_p6), %s596_s15, 4 }
  0xb2   : > { %s597_s27 = scalar_lea.sflag (!%p2960_p6), [#allocation3], %s596_s15  ;;  %s600_s24 = scalar_lea.vmem (!%p2960_p6), [#allocation2], %s1773_s19 }
  0xb8   : > { %2386 = dma.done.wait (%p2702_p0), %s597_s27, 256  }
  0xb9   : > { %2388 = vsyncadd (%p2702_p0), %s597_s27, 4294967040  ;;  %p2961_p9 = scmp.ne.s32.totalorder %s2949_s20, 0 }
  0xbb   : > { %2390 = dma.done.wait (%p2961_p9), [#allocation5], 3088  }
  0xbc   : > { %2392 = vsyncadd (%p2961_p9), [#allocation5], 4294964208 }
  0xbd   : > { %2394 = dma.done.wait (%p2961_p9), [#allocation8], 6144  }
  0xbe   : > { %2396 = vsyncadd (%p2961_p9), [#allocation8], 4294961152 }
  0xbf   : > { %2398 = dma.done.wait (%p2961_p9), [#allocation11], 2048  }
  0xc0   : > { %2400 = vsyncadd (%p2961_p9), [#allocation11], 4294965248  ;;  %v2429_v0 = vmov 0.0   ;;  %v693_v1 = vld [vmem:[%s600_s24] sm:$0xff]  ;;  %v694_v2 = vld [vmem:[%s600_s24 + $0x8] sm:$0xff]  ;;  %s2430_s21 = smov 32   ;;  %v732_v54 = vlaneseq }
  0xc1   : > { %823 = vmatprep.mubr.f32.mxu0 %v2429_v0  ;;  %1120 = vmatprep.mubr.f32.mxu1 %v2429_v0  ;;  %v707_v3 = vld [vmem:[#allocation4 + $0x8] sm:$0xff]  ;;  %v706_v5 = vld [vmem:[#allocation4] sm:$0xff]  ;;  %v709_v20 = vld [vmem:[#allocation4 + $0x18] sm:$0xff]  ;;  %s2962_s20 = sadd.s32 4294967295, %s2415_s30   ;;  %s2963_s7 = sld [smem:[#allocation16_spill]]  ;;  %vm703_vm0 = vcmask 261120  }
  0xc2   : > { %697 = vrot.lane.b32.xlu0 %v693_v1, %s2430_s21  ;;  %v711_v4 = vld [vmem:[#allocation4 + $0x28] sm:$0xff]  ;;  %v710_v6 = vld [vmem:[#allocation4 + $0x20] sm:$0xff]  ;;  %v713_v21 = vld [vmem:[#allocation4 + $0x38] sm:$0xff]  ;;  %s1779_s11 = sshll.u32 %s2962_s20, 1  ;;  %vm752_vm1 = vcmask 392192   ;;  %v2805_v55 = vshrl.u32 %v732_v54, 7 }
  0xc3   : > { %v1940_v7 = vpack.c.bf16 %v711_v4, %v707_v3  ;;  %v1942_v8 = vpack.c.bf16 %v710_v6, %v706_v5  ;;  %v715_v9 = vld [vmem:[#allocation4 + $0x48] sm:$0xff]  ;;  %v714_v11 = vld [vmem:[#allocation4 + $0x40] sm:$0xff]  ;;  %v1952_v23 = vpack.c.bf16 %v713_v21, %v709_v20  ;;  %p679_p0 = scmp.lt.s32.totalorder %s1779_s11, 3  ;;  %v708_v24 = vld [vmem:[#allocation4 + $0x10] sm:$0xff]  ;;  %vm1051_vm6 = vcmask 1043456   ;;  %s2964_s0 = sld [smem:[#allocation21_spill]] }
  0xc4   : > { %v719_v10 = vld [vmem:[#allocation4 + $0x68] sm:$0xff]  ;;  %v718_v13 = vld [vmem:[#allocation4 + $0x60] sm:$0xff]  ;;  %v712_v25 = vld [vmem:[#allocation4 + $0x30] sm:$0xff]  ;;  %v2808_v56 = vsub.s32 1, %v2805_v55  ;;  %vm1044_vm7 = vcmask 31744   ;;  %s2965_s15 = sld [smem:[#allocation19_spill]] }
  0xc5   : > { %v1944_v12 = vpack.c.bf16 %v719_v10, %v715_v9  ;;  %v723_v14 = vld [vmem:[#allocation4 + $0x88] sm:$0xff]  ;;  %1941 = vmatprep.subr.bf16.mxu0 %v1940_v7  ;;  %v1946_v16 = vpack.c.bf16 %v718_v13, %v714_v11  ;;  %v722_v18 = vld [vmem:[#allocation4 + $0x80] sm:$0xff]  ;;  %s2977_s11 = smov (!%p679_p0, %s1779_s11), 3  ;;  %v717_v26 = vld [vmem:[#allocation4 + $0x58] sm:$0xff]  ;;  %v1954_v29 = vpack.c.bf16 %v712_v25, %v708_v24  ;;  %s2966_s24 = sld [smem:[#allocation22_spill]]  ;;  %vm1553_vm8 = vcmask 293888  }
  0xc6   : > { %v727_v15 = vld [vmem:[#allocation4 + $0xa8] sm:$0xff]  ;;  %699 = vrot.lane.b32.xlu0 %v694_v2, %s2430_s21  ;;  %1943 = vmatpush1.bf16.msra.mxu0 %v1942_v8  ;;  %v726_v19 = vld [vmem:[#allocation4 + $0xa0] sm:$0xff]  ;;  %s1780_s13 = sshll.u32 %s2977_s11, 3  ;;  %v721_v27 = vld [vmem:[#allocation4 + $0x78] sm:$0xff]  ;;  %v742_v2 = vsub.s32 2, %v2805_v55  ;;  %s2967_s16 = sld [smem:[#allocation20_spill]] }
  0xc7   : > { %1945 = vmatprep.subr.bf16.mxu0 %v1944_v12  ;;  %v1948_v17 = vpack.c.bf16 %v727_v15, %v723_v14  ;;  %v1950_v22 = vpack.c.bf16 %v726_v19, %v722_v18  ;;  %s682_s9 = scalar_lea.vmem %s2963_s7, %s1780_s13  ;;  %v1956_v31 = vpack.c.bf16 %v721_v27, %v717_v26  ;;  %v716_v32 = vld [vmem:[#allocation4 + $0x50] sm:$0xff]  ;;  %v725_v35 = vld [vmem:[#allocation4 + $0x98] sm:$0xff]  ;;  %v937_v45 = vld [vmem:[%s2913_s4] sm:$0xff]  ;;  %s2968_s30 = sld [smem:[#allocation25_spill]] }
  0xc8   : > { %v691_v28 = vld [vmem:[%s682_s9] sm:$0xff]  ;;  %v720_v33 = vld [vmem:[#allocation4 + $0x70] sm:$0xff]  ;;  %v729_v36 = vld [vmem:[#allocation4 + $0xb8] sm:$0xff] }
  0xc9   : > { %v692_v37 = vld [vmem:[%s682_s9 + $0x8] sm:$0xff]  ;;  %v1958_v38 = vpack.c.bf16 %v720_v33, %v716_v32  ;;  %v1960_v40 = vpack.c.bf16 %v729_v36, %v725_v35  ;;  %v724_v41 = vld [vmem:[#allocation4 + $0x90] sm:$0xff]  ;;  %v940_v49 = vld [vmem:[%s2913_s4 + $0x18] sm:$0xff] }
  0xca   : > { %1947 = vmatpush1.bf16.msra.mxu0 %v1946_v16  ;;  %v728_v42 = vld [vmem:[#allocation4 + $0xb0] sm:$0xff]  ;;  %v938_v46 = vld [vmem:[%s2913_s4 + $0x8] sm:$0xff]  ;;  %v2813_v57 = vld [vmem:[%s2912_s3] sm:$0xf] }
  0xcb   : > { %1949 = vmatprep.subr.bf16.mxu0 %v1948_v17  ;;  %v1962_v44 = vpack.c.bf16 %v728_v42, %v724_v41  ;;  %v1964_v47 = vpack.c.bf16 %v938_v46, %v937_v45  ;;  %v939_v48 = vld [vmem:[%s2913_s4 + $0x10] sm:$0xff]  ;;  %v1189_v51 = vld [vmem:[#allocation7] sm:$0xff]  ;;  %v739_v58 = vrot.slane %v2813_v57, %v2808_v56  ;;  %v743_v6 = vrot.slane %v2813_v57, %v742_v2  ;;  %v1192_v19 = vld [vmem:[#allocation7 + $0x18] sm:$0xff] }
  0xcc   : > { %v1968_v50 = vpack.c.bf16 %v940_v49, %v939_v48  ;;  %v1190_v52 = vld [vmem:[#allocation7 + $0x8] sm:$0xff]  ;;  %v1191_v18 = vld [vmem:[#allocation7 + $0x10] sm:$0xff]  ;;  %v1193_v24 = vld [vmem:[#allocation7 + $0x20] sm:$0xff] }
  0xcd   : > { %v1972_v53 = vpack.c.bf16 %v1190_v52, %v1189_v51  ;;  %v1194_v25 = vld [vmem:[#allocation7 + $0x28] sm:$0xff]  ;;  %v1197_v35 = vld [vmem:[#allocation7 + $0x40] sm:$0xff]  ;;  %v1203_v45 = vld [vmem:[#allocation7 + $0x70] sm:$0xff] }
  0xce   : > { %1951 = vmatpush1.bf16.msra.mxu0 %v1950_v22  ;;  %v1976_v22 = vpack.c.bf16 %v1192_v19, %v1191_v18  ;;  %v1980_v27 = vpack.c.bf16 %v1194_v25, %v1193_v24  ;;  %v1198_v36 = vld [vmem:[#allocation7 + $0x48] sm:$0xff]  ;;  %v1201_v42 = vld [vmem:[#allocation7 + $0x60] sm:$0xff]  ;;  %v1204_v46 = vld [vmem:[#allocation7 + $0x78] sm:$0xff] }
  0xcf   : > { %1953 = vmatprep.subr.bf16.mxu0 %v1952_v23  ;;  %v1029_v51 = vld [vmem:[%s2915_s6] sm:$0xff]  ;;  %v1297_v18 = vld [vmem:[#allocation9 + $0x50] sm:$0xff]  ;;  %v1300_v19 = vld [vmem:[#allocation9 + $0x68] sm:$0xff] }
  0xd0   : > { %v1043_v52 = vcombine.high %v1029_v51, %v1029_v51  ;;  %v1290_v54 = vld [vmem:[#allocation9 + $0x18] sm:$0xff]  ;;  %v1301_v24 = vld [vmem:[#allocation9 + $0x70] sm:$0xff]  ;;  %v1304_v25 = vld [vmem:[#allocation9 + $0x88] sm:$0xff] }
  0xd1   : > { %v1294_v2 = vld [vmem:[#allocation9 + $0x38] sm:$0xff] }
  0xd2   : > { %1794 = vmatprep.subr.msk.mxu1 %vm1051_vm6, %v1043_v52 }
  0xd3   : > { %1795 = vmatpush1.msk.msra.mxu1 %vm1051_vm6, %v1029_v51 }
 0x134   : > { %v698_v30 = vpop.permute.xlu0 %697 }
 0x135   : > { %v704_v34 = vsel %vm703_vm0, %v691_v28, %v698_v30  ;;  %v1196_v30 = vld [vmem:[#allocation7 + $0x38] sm:$0xff] }
 0x136   : > { %1783 = vmatmul.mubr.msk.f32.vlgmr.msra.gmra.mrb[0].mxu0 %vm752_vm1, %v704_v34 }
 0x137   : > { %1955 = vmatpush1.bf16.msra.mxu0 %v1954_v29  ;;  %829 = vmatprep.mubr.f32.mxu0 %v2429_v0  ;;  %v1195_v29 = vld [vmem:[#allocation7 + $0x30] sm:$0xff] }
 0x138   : > { %v700_v39 = vpop.permute.xlu0 %699  ;;  %1957 = vmatprep.subr.bf16.mxu0 %v1956_v31 }
 0x139   : > { %v705_v43 = vsel %vm703_vm0, %v692_v37, %v700_v39  ;;  %v1199_v39 = vld [vmem:[#allocation7 + $0x50] sm:$0xff] }
 0x13a   : > { %1784 = vmatmul.mubr.msk.f32.gmra.mrb[2].mxu0 %vm752_vm1, %v705_v43 }
 0x13b   : > { %1959 = vmatpush1.bf16.msra.mxu0 %v1958_v38  ;;  %900 = vmatprep.mubr.f32.mxu0 %v2429_v0  ;;  %v1988_v38 = vpack.c.bf16 %v1198_v36, %v1197_v35  ;;  %v1307_v35 = vld [vmem:[#allocation9 + $0xa0] sm:$0xff]  ;;  %v1309_v36 = vld [vmem:[#allocation9 + $0xb0] sm:$0xff] }
 0x13c   : > { %1961 = vmatprep.subr.bf16.mxu0 %v1960_v40  ;;  %v1200_v40 = vld [vmem:[#allocation7 + $0x58] sm:$0xff] }
 0x13d   : > { %v1992_v41 = vpack.c.bf16 %v1200_v40, %v1199_v39  ;;  %v2026_v39 = vpack.c.bf16 %v1309_v36, %v1307_v35 }
 0x13f   : > { %1963 = vmatpush1.bf16.msra.mxu0 %v1962_v44 }
 0x140   : > { %1965 = vmatprep.subr.bf16.mxu0 %v1964_v47 }
 0x142   : > { %1785 = vmatmul.mubr.msk.f32.vlgmr.msra.gmra.mrb[4].mxu0 %vm752_vm1, %v704_v34  ;;  %v1984_v34 = vpack.c.bf16 %v1196_v30, %v1195_v29  ;;  %v1303_v29 = vld [vmem:[#allocation9 + $0x80] sm:$0xff]  ;;  %v1305_v30 = vld [vmem:[#allocation9 + $0x90] sm:$0xff] }
 0x143   : > { %906 = vmatprep.mubr.f32.mxu0 %v2429_v0  ;;  %1967 = vmatpush3.bf16.msra.mxu0 %v1964_v47  ;;  %v2000_v47 = vpack.c.bf16 %v1204_v46, %v1203_v45 }
 0x144   : > { %1969 = vmatprep.subr.bf16.mxu0 %v1968_v50 }
 0x146   : > { %1786 = vmatmul.mubr.msk.f32.gmra.mrb[6].mxu0 %vm752_vm1, %v705_v43  ;;  %v1202_v43 = vld [vmem:[#allocation7 + $0x68] sm:$0xff] }
 0x147   : > { %1971 = vmatpush3.bf16.msra.mxu0 %v1968_v50  ;;  %v1996_v44 = vpack.c.bf16 %v1202_v43, %v1201_v42  ;;  %v1313_v42 = vld [vmem:[#allocation9 + $0xd0] sm:$0xff]  ;;  %v1316_v43 = vld [vmem:[#allocation9 + $0xe8] sm:$0xff] }
 0x148   : > { %1973 = vmatprep.subr.bf16.mxu0 %v1972_v53 }
 0x209   : > { %v2817_v59 = vpop.f32.mrb[0].mxu0 }
 0x20a   : > { %v827_v60 = vpop.f32.mrb[1].mxu0 }
 0x20b   : > { %v828_v61 = vadd.f32 %v827_v60, %v739_v58  ;;  %v1287_v60 = vld [vmem:[#allocation9] sm:$0xff] }
 0x20d   : > { %v917_v62 = vmin.f32 %v828_v61, 0.0  ;;  %v2819_v63 = vpop.f32.mrb[2].mxu0  ;;  %vm913_vm2 = vcmp.gt.f32.partialorder %v828_v61, 0.0 }
 0x20e   : > { %v833_v1 = vpop.f32.mrb[3].mxu0 }
 0x20f   : > { %v921_v3 = vmul.f32 1.442695, %v917_v62  ;;  %v834_v4 = vadd.f32 %v833_v1, %v739_v58  ;;  %v1791_v62 = vld [vmem:[%s2914_s5] ss:$0 sm:$0xff]  ;;  %v1292_v1 = vld [vmem:[#allocation9 + $0x28] sm:$0xff] }
 0x211   : > { %2167 = vpow2.f32 %v921_v3  ;;  %v919_v5 = vmin.f32 %v834_v4, 0.0  ;;  %vm915_vm3 = vcmp.gt.f32.partialorder %v834_v4, 0.0 }
 0x213   : > { %v925_v7 = vmul.f32 1.442695, %v919_v5 }
 0x215   : > { %2169 = vpow2.f32 %v925_v7  ;;  %v902_v8 = vpop.f32.mrb[4].mxu0  ;;  %v2008_v7 = vpack.c.bf16 %v1294_v2, %v1292_v1 }
 0x216   : > { %v903_v9 = vadd.f32 %v902_v8, %v743_v6  ;;  %v2823_v10 = vpop.f32.mrb[5].mxu0  ;;  %v1291_v8 = vld [vmem:[#allocation9 + $0x20] sm:$0xff] }
 0x218   : > { %v918_v11 = vmin.f32 %v903_v9, 0.0  ;;  %vm914_vm4 = vcmp.gt.f32.partialorder %v903_v9, 0.0 }
 0x219   : > { %v908_v12 = vpop.f32.mrb[6].mxu0 }
 0x21a   : > { %v923_v13 = vmul.f32 1.442695, %v918_v11  ;;  %v2825_v14 = vpop.f32.mrb[7].mxu0  ;;  %v909_v26 = vadd.f32 %v908_v12, %v743_v6  ;;  %v1296_v11 = vld [vmem:[#allocation9 + $0x48] sm:$0xff]  ;;  %v1298_v12 = vld [vmem:[#allocation9 + $0x58] sm:$0xff] }
 0x21b   : > { %v2168_v15 = vpop.eup %2167 }
 0x21c   : > { %2171 = vpow2.f32 %v923_v13  ;;  %v1787_v16 = vadd.f32 -1.0, %v2168_v15  ;;  %v920_v32 = vmin.f32 %v909_v26, 0.0  ;;  %vm916_vm5 = vcmp.gt.f32.partialorder %v909_v26, 0.0 }
 0x21e   : > { %v933_v17 = vsel %vm913_vm2, %v828_v61, %v1787_v16  ;;  %v927_v37 = vmul.f32 1.442695, %v920_v32  ;;  %v1289_v61 = vld [vmem:[#allocation9 + $0x10] sm:$0xff]  ;;  %v2012_v16 = vpack.c.bf16 %v1298_v12, %v1296_v11  ;;  %v1310_v32 = vld [vmem:[#allocation9 + $0xb8] sm:$0xff] }
 0x21f   : > { %v2170_v20 = vpop.eup %2169  ;;  %1862 = vmatprep.mubr.msk.f32.mxu0 %vm703_vm0, %v933_v17  ;;  %v2006_v5 = vpack.c.bf16 %v1289_v61, %v1287_v60  ;;  %v1295_v17 = vld [vmem:[#allocation9 + $0x40] sm:$0xff]  ;;  %v734_v60 = vsub.s32 0, %v2805_v55 }
 0x220   : > { %v1789_v21 = vadd.f32 -1.0, %v2170_v20  ;;  %2173 = vpow2.f32 %v927_v37  ;;  %v1302_v20 = vld [vmem:[#allocation9 + $0x78] sm:$0xff]  ;;  %v1312_v37 = vld [vmem:[#allocation9 + $0xc8] sm:$0xff] }
 0x222   : > { %v935_v23 = vsel %vm915_vm3, %v834_v4, %v1789_v21  ;;  %v2014_v21 = vpack.c.bf16 %v1297_v18, %v1295_v17  ;;  %v735_v17 = vrot.slane %v2813_v57, %v734_v60 }
 0x223   : > { %1863 = vmatmul.mubr.msk.f32.vlgmr.msra.gmra.mrb[8].mxu0 %vm703_vm0, %v935_v23  ;;  %v1299_v23 = vld [vmem:[#allocation9 + $0x60] sm:$0xff] }
 0x224   : > { %1975 = vmatpush3.bf16.msra.mxu0 %v1972_v53  ;;  %v1288_v53 = vld [vmem:[#allocation9 + $0x8] sm:$0xff] }
 0x225   : > { %1977 = vmatprep.subr.bf16.mxu0 %v1976_v22  ;;  %v2004_v58 = vpack.c.bf16 %v1290_v54, %v1288_v53 }
 0x226   : > { %v2172_v28 = vpop.eup %2171 }
 0x227   : > { %v1788_v31 = vadd.f32 -1.0, %v2172_v28  ;;  %2005 = vmatprep.subr.bf16.mxu1 %v2004_v58  ;;  %v1030_v58 = vld [vmem:[%s2965_s15] sm:$0x3]  ;;  %s2970_s15 = sld [smem:[#allocation24_spill]] }
 0x228   : > { %1979 = vmatpush3.bf16.msra.mxu0 %v1976_v22  ;;  %v2016_v22 = vpack.c.bf16 %v1302_v20, %v1300_v19  ;;  %v1035_v61 = vrot.slane %v1030_v58, %v734_v60 }
 0x229   : > { %v934_v33 = vsel %vm914_vm4, %v903_v9, %v1788_v31  ;;  %1981 = vmatprep.subr.bf16.mxu0 %v1980_v27  ;;  %v1293_v9 = vld [vmem:[#allocation9 + $0x30] sm:$0xff]  ;;  %v1308_v31 = vld [vmem:[#allocation9 + $0xa8] sm:$0xff] }
 0x22a   : > { %1897 = vmatprep.mubr.f32.mxu0 %v934_v33  ;;  %v2174_v48 = vpop.eup %2173  ;;  %v2010_v13 = vpack.c.bf16 %v1293_v9, %v1291_v8  ;;  %v2022_v33 = vpack.c.bf16 %v1305_v30, %v1303_v29  ;;  %v1799_v30 = vld [vmem:[%s2967_s16] ss:$0 sm:$0xff] }
 0x22b   : > { %v1790_v49 = vadd.f32 -1.0, %v2174_v48  ;;  %v1317_v48 = vld [vmem:[#allocation9 + $0xf0] sm:$0xff] }
 0x22c   : > { %1983 = vmatpush3.bf16.msra.mxu0 %v1980_v27  ;;  %v2018_v27 = vpack.c.bf16 %v1301_v24, %v1299_v23  ;;  %v1798_v24 = vld [vmem:[#allocation6] ss:$0 sm:$0xff] }
 0x22d   : > { %1985 = vmatprep.subr.bf16.mxu0 %v1984_v34  ;;  %v936_v50 = vsel %vm916_vm5, %v909_v26, %v1790_v49  ;;  %v1306_v26 = vld [vmem:[#allocation9 + $0x98] sm:$0xff] }
 0x22e   : > { %v2020_v28 = vpack.c.bf16 %v1306_v26, %v1304_v25 }
 0x230   : > { %1987 = vmatpush3.bf16.msra.mxu0 %v1984_v34  ;;  %v2024_v34 = vpack.c.bf16 %v1310_v32, %v1308_v31  ;;  %v832_v31 = vadd.f32 %v2819_v63, %v735_v17 }
 0x231   : > { %1989 = vmatprep.subr.bf16.mxu0 %v1988_v38 }
 0x234   : > { %1991 = vmatpush3.bf16.msra.mxu0 %v1988_v38  ;;  %v1314_v38 = vld [vmem:[#allocation9 + $0xd8] sm:$0xff] }
 0x235   : > { %1993 = vmatprep.subr.bf16.mxu0 %v1992_v41  ;;  %v2028_v40 = vpack.c.bf16 %v1314_v38, %v1312_v37 }
 0x238   : > { %1995 = vmatpush3.bf16.msra.mxu0 %v1992_v41  ;;  %v1311_v41 = vld [vmem:[#allocation9 + $0xc0] sm:$0xff] }
 0x239   : > { %1997 = vmatprep.subr.bf16.mxu0 %v1996_v44  ;;  %v2030_v45 = vpack.c.bf16 %v1313_v42, %v1311_v41 }
 0x23c   : > { %1999 = vmatpush3.bf16.msra.mxu0 %v1996_v44  ;;  %v1318_v44 = vld [vmem:[#allocation9 + $0xf8] sm:$0xff] }
 0x23d   : > { %2001 = vmatprep.subr.bf16.mxu0 %v2000_v47  ;;  %v2032_v46 = vpack.c.bf16 %v1318_v44, %v1316_v43 }
 0x240   : > { %2003 = vmatpush3.bf16.msra.mxu0 %v2000_v47  ;;  %v1315_v47 = vld [vmem:[#allocation9 + $0xe0] sm:$0xff] }
 0x241   : > { %v2034_v49 = vpack.c.bf16 %v1317_v48, %v1315_v47 }
 0x243   : > { %1898 = vmatmul.mubr.f32.vlgmr.msra.gmra.mrb[10].mxu0 %v936_v50  ;;  %v1800_v50 = vld [vmem:[%s2964_s0] ss:$0 sm:$0xff]  ;;  %s2969_s0 = sld [smem:[#allocation23_spill]] }
 0x2f6   : > { %v1864_v3 = vpop.f32.mrb[8].mxu0 }
 0x2f7   : > { %v1020_v4 = vpop.f32.mrb[9].mxu0  ;;  %v1026_v15 = vadd.f32 %v1864_v3, %v1791_v62 }
 0x2f8   : > { %v1021_v6 = vadd.f32 %v1791_v62, %v1020_v4 }
 0x2fa   : > { %1796 = vmatmul.mubr.msk.f32.vlgmr.msra.gmra.mrb[0].mxu1 %vm1044_vm7, %v1021_v6 }
 0x2fb   : > { %2007 = vmatpush1.bf16.msra.mxu1 %v2006_v5  ;;  %1126 = vmatprep.mubr.f32.mxu1 %v2429_v0 }
 0x2fc   : > { %2009 = vmatprep.subr.bf16.mxu1 %v2008_v7 }
 0x2fe   : > { %1797 = vmatmul.mubr.msk.f32.gmra.mrb[2].mxu1 %vm1044_vm7, %v1026_v15  ;;  %v1039_v15 = vrot.slane %v1030_v58, %v2808_v56 }
 0x2ff   : > { %2011 = vmatpush1.bf16.msra.mxu1 %v2010_v13  ;;  %1395 = vmatprep.mubr.f32.mxu1 %v2429_v0 }
 0x300   : > { %2013 = vmatprep.subr.bf16.mxu1 %v2012_v16  ;;  %v1319_v16 = vld [vmem:[%s2966_s24] sm:$0x3]  ;;  %s2971_s24 = sld [smem:[#allocation26_spill]] }
 0x301   : > { %v1324_v19 = vrot.slane %v1319_v16, %v734_v60 }
 0x303   : > { %2015 = vmatpush1.bf16.msra.mxu1 %v2014_v21  ;;  %v826_v21 = vadd.f32 %v2817_v59, %v735_v17  ;;  %v1532_v17 = vld [vmem:[#allocation10 + $0x18] sm:$0xff] }
 0x304   : > { %2017 = vmatprep.subr.bf16.mxu1 %v2016_v22 }
 0x306   : > { %s689_s20 = scalar_lea.vmem %s2971_s24, %s1780_s13 }
 0x307   : > { %2019 = vmatpush1.bf16.msra.mxu1 %v2018_v27 }
 0x308   : > { %2021 = vmatprep.subr.bf16.mxu1 %v2020_v28 }
 0x30b   : > { %2023 = vmatpush1.bf16.msra.mxu1 %v2022_v33 }
 0x30c   : > { %2025 = vmatprep.subr.bf16.mxu1 %v2024_v34 }
 0x30f   : > { %2027 = vmatpush1.bf16.msra.mxu1 %v2026_v39 }
 0x310   : > { %2029 = vmatprep.subr.bf16.mxu1 %v2028_v40 }
 0x313   : > { %2031 = vmatpush1.bf16.msra.mxu1 %v2030_v45 }
 0x314   : > { %2033 = vmatprep.subr.bf16.mxu1 %v2032_v46 }
 0x316   : > { %v1899_v51 = vpop.f32.mrb[10].mxu0 }
 0x317   : > { %v1278_v52 = vpop.f32.mrb[11].mxu0  ;;  %2035 = vmatpush1.bf16.msra.mxu1 %v2034_v49  ;;  %v1284_v54 = vadd.f32 %v1899_v51, %v1800_v50  ;;  %v746_v49 = vsub.s32 3, %v2805_v55 }
 0x318   : > { %v1279_v53 = vadd.f32 %v1800_v50, %v1278_v52  ;;  %v1328_v50 = vrot.slane %v1319_v16, %v2808_v56 }
 0x319   : > { %v747_v51 = vrot.slane %v2813_v57, %v746_v49 }
 0x31a   : > { %1396 = vmatmul.mubr.f32.vlgmr.msra.gmra.mrb[4].mxu1 %v1279_v53 }
 0x31b   : > { %1401 = vmatprep.mubr.f32.mxu1 %v2429_v0 }
 0x31e   : > { %1402 = vmatmul.mubr.f32.gmra.mrb[6].mxu1 %v1284_v54  ;;  %v905_v54 = vadd.f32 %v2823_v10, %v747_v51 }
 0x3cd   : > { %v1122_v62 = vpop.f32.mrb[0].mxu1 }
 0x3ce   : > { %v1123_v1 = vadd.f32 %v1122_v62, %v1035_v61  ;;  %v1124_v2 = vpop.f32.mrb[1].mxu1 }
 0x3cf   : > { %v1125_v18 = vadd.f32 %v1124_v2, %v1039_v15 }
 0x3d0   : > { %v1133_v3 = vsub.f32 0.0, %v1123_v1  ;;  %v911_v1 = vadd.f32 %v2825_v14, %v747_v51  ;;  %v1442_v14 = vld [vmem:[%s2968_s30] sm:$0xf] }
 0x3d1   : > { %v1128_v4 = vpop.f32.mrb[2].mxu1  ;;  %1900 = vmatprep.subr.msk.mxu0 %vm1051_vm6, %v1442_v14 }
 0x3d2   : > { %v1135_v5 = vmul.f32 1.442695, %v1133_v3  ;;  %v1129_v6 = vadd.f32 %v1128_v4, %v1035_v61  ;;  %v1130_v7 = vpop.f32.mrb[3].mxu1  ;;  %1901 = vmatpush3.msk.msra.mxu0 %vm1051_vm6, %v1442_v14 }
 0x3d3   : > { %v1131_v26 = vadd.f32 %v1130_v7, %v1039_v15  ;;  %v1531_v15 = vld [vmem:[#allocation10 + $0x10] sm:$0xff] }
 0x3d4   : > { %2175 = vpow2.f32 %v1135_v5  ;;  %v1134_v8 = vsub.f32 0.0, %v1129_v6 }
 0x3d6   : > { %v1137_v0 = vmul.f32 1.442695, %v1134_v8 }
 0x3d8   : > { %2177 = vpow2.f32 %v1137_v0 }
 0x3de   : > { %v2176_v9 = vpop.eup %2175 }
 0x3df   : > { %v1139_v11 = vadd.f32 1.0, %v2176_v9 }
 0x3e1   : > { %2179 = vrcp.f32 %v1139_v11 }
 0x3e2   : > { %v2178_v12 = vpop.eup %2177 }
 0x3e3   : > { %v1140_v13 = vadd.f32 1.0, %v2178_v12  ;;  %v1529_v12 = vld [vmem:[#allocation10] sm:$0xff] }
 0x3e5   : > { %2181 = vrcp.f32 %v1140_v13  ;;  %v1530_v13 = vld [vmem:[#allocation10 + $0x8] sm:$0xff] }
 0x3e6   : > { %v2036_v16 = vpack.c.bf16 %v1530_v13, %v1529_v12 }
 0x3e8   : > { %2037 = vmatprep.subr.bf16.mxu1 %v2036_v16 }
 0x3e9   : > { %2039 = vmatpush3.bf16.msra.mxu1 %v2036_v16 }
 0x3eb   : > { %v2180_v20 = vpop.eup %2179 }
 0x3ec   : > { %v1145_v22 = vmul.f32 %v2180_v20, %v1125_v18  ;;  %v2040_v18 = vpack.c.bf16 %v1532_v17, %v1531_v15  ;;  %v1534_v20 = vld [vmem:[#allocation10 + $0x28] sm:$0xff] }
 0x3ed   : > { %v1397_v23 = vpop.f32.mrb[4].mxu1 }
 0x3ee   : > { %v1147_v25 = vadd.f32 %v1145_v22, %v826_v21  ;;  %v1398_v27 = vadd.f32 %v1397_v23, %v1324_v19  ;;  %v1399_v28 = vpop.f32.mrb[5].mxu1  ;;  %2041 = vmatprep.subr.bf16.mxu1 %v2040_v18 }
 0x3ef   : > { %v2182_v29 = vpop.eup %2181  ;;  %v1400_v52 = vadd.f32 %v1399_v28, %v1328_v50  ;;  %2043 = vmatpush3.bf16.msra.mxu1 %v2040_v18  ;;  %v1537_v28 = vld [vmem:[#allocation10 + $0x40] sm:$0xff] }
 0x3f0   : > { %v1146_v32 = vmul.f32 %v2182_v29, %v1131_v26  ;;  %v1408_v33 = vsub.f32 0.0, %v1398_v27  ;;  %v1156_v34 = vmul.f32 %v1798_v24, %v1147_v25  ;;  %v1536_v25 = vld [vmem:[#allocation10 + $0x38] sm:$0xff]  ;;  %v1538_v29 = vld [vmem:[#allocation10 + $0x48] sm:$0xff] }
 0x3f1   : > { %v1403_v35 = vpop.f32.mrb[6].mxu1 }
 0x3f2   : > { %v1148_v36 = vadd.f32 %v1146_v32, %v832_v31  ;;  %v1410_v59 = vmul.f32 1.442695, %v1408_v33  ;;  %v1404_v37 = vadd.f32 %v1403_v35, %v1324_v19  ;;  %v1405_v38 = vpop.f32.mrb[7].mxu1  ;;  %v1165_v39 = vadd.f32 %v1799_v30, %v1156_v34  ;;  %v1533_v19 = vld [vmem:[#allocation10 + $0x20] sm:$0xff]  ;;  %v1539_v32 = vld [vmem:[#allocation10 + $0x50] sm:$0xff]  ;;  %v1540_v33 = vld [vmem:[#allocation10 + $0x58] sm:$0xff] }
 0x3f3   : > { %v1406_v61 = vadd.f32 %v1405_v38, %v1328_v50  ;;  %v2044_v22 = vpack.c.bf16 %v1534_v20, %v1533_v19  ;;  %v2052_v31 = vpack.c.bf16 %v1538_v29, %v1537_v28  ;;  %v2056_v34 = vpack.c.bf16 %v1540_v33, %v1539_v32  ;;  %v1541_v35 = vld [vmem:[#allocation10 + $0x60] sm:$0xff]  ;;  %v1544_v38 = vld [vmem:[#allocation10 + $0x78] sm:$0xff] }
 0x3f4   : > { %2183 = vpow2.f32 %v1410_v59  ;;  %v1409_v40 = vsub.f32 0.0, %v1404_v37  ;;  %v1167_v41 = vsel %vm1044_vm7, %v1165_v39, -inf  ;;  %v1157_v42 = vmul.f32 %v1798_v24, %v1148_v36  ;;  %v1535_v24 = vld [vmem:[#allocation10 + $0x30] sm:$0xff]  ;;  %v1542_v36 = vld [vmem:[#allocation10 + $0x68] sm:$0xff] }
 0x3f5   : > { %1168 = vmax.xlane.f32.xlu1 %v1167_v41  ;;  %2045 = vmatprep.subr.bf16.mxu1 %v2044_v22  ;;  %v2048_v27 = vpack.c.bf16 %v1536_v25, %v1535_v24  ;;  %v2060_v59 = vpack.c.bf16 %v1542_v36, %v1541_v35  ;;  %v1543_v37 = vld [vmem:[#allocation10 + $0x70] sm:$0xff] }
 0x3f6   : > { %v1412_v43 = vmul.f32 1.442695, %v1409_v40  ;;  %v1166_v44 = vadd.f32 %v1799_v30, %v1157_v42  ;;  %2047 = vmatpush3.bf16.msra.mxu1 %v2044_v22  ;;  %v1801_v40 = vld [vmem:[%s2969_s0] ss:$0 sm:$0xff] }
 0x3f7   : > { %2049 = vmatprep.subr.bf16.mxu1 %v2048_v27 }
 0x3f8   : > { %2185 = vpow2.f32 %v1412_v43  ;;  %v1170_v63 = vsel %vm1044_vm7, %v1166_v44, -inf  ;;  %v1802_v43 = vld [vmem:[%s2970_s15] ss:$0 sm:$0xff] }
 0x3f9   : > { %1171 = vmax.xlane.f32.xlu1 %v1170_v63 }
 0x3fa   : > { %2051 = vmatpush3.bf16.msra.mxu1 %v2048_v27 }
 0x3fb   : > { %2053 = vmatprep.subr.bf16.mxu1 %v2052_v31 }
 0x3fe   : > { %v2184_v45 = vpop.eup %2183  ;;  %2055 = vmatpush3.bf16.msra.mxu1 %v2052_v31 }
 0x3ff   : > { %v1414_v46 = vadd.f32 1.0, %v2184_v45  ;;  %2057 = vmatprep.subr.bf16.mxu1 %v2056_v34 }
 0x401   : > { %2187 = vrcp.f32 %v1414_v46 }
 0x402   : > { %v2186_v47 = vpop.eup %2185  ;;  %2059 = vmatpush3.bf16.msra.mxu1 %v2056_v34 }
 0x403   : > { %v1415_v48 = vadd.f32 1.0, %v2186_v47  ;;  %2061 = vmatprep.subr.bf16.mxu1 %v2060_v59 }
 0x405   : > { %2189 = vrcp.f32 %v1415_v48 }
 0x406   : > { %2063 = vmatpush3.bf16.msra.mxu1 %v2060_v59 }
 0x40b   : > { %v2188_v53 = vpop.eup %2187 }
 0x40c   : > { %v1420_v58 = vmul.f32 %v2188_v53, %v1400_v52 }
 0x40e   : > { %v2865_v60 = vadd.f32 %v1420_v58, %v905_v54 }
 0x40f   : > { %v2190_v62 = vpop.eup %2189 }
 0x410   : > { %v1421_v2 = vmul.f32 %v2190_v62, %v1406_v61  ;;  %v1431_v42 = vmul.f32 %v1801_v40, %v2865_v60 }
 0x412   : > { %v2868_v3 = vadd.f32 %v1421_v2, %v911_v1  ;;  %v1440_v45 = vadd.f32 %v1802_v43, %v1431_v42 }
 0x414   : > { %v1432_v41 = vmul.f32 %v1801_v40, %v2868_v3 }
 0x482   : > { %v1169_v55 = vpop.xlane.xlu1 %1168 }
 0x483   : > { %v1173_v4 = vsub.f32 %v1165_v39, %v1169_v55  ;;  %v2064_v39 = vpack.c.bf16 %v1544_v38, %v1543_v37 }
 0x485   : > { %v1175_v5 = vmul.f32 1.442695, %v1173_v4  ;;  %2065 = vmatprep.subr.bf16.mxu1 %v2064_v39 }
 0x486   : > { %v1172_v56 = vpop.xlane.xlu1 %1171  ;;  %2067 = vmatpush3.bf16.msra.mxu1 %v2064_v39 }
 0x487   : > { %2191 = vpow2.f32 %v1175_v5  ;;  %v1174_v57 = vsub.f32 %v1166_v44, %v1172_v56  ;;  %v1441_v44 = vadd.f32 %v1802_v43, %v1432_v41 }
 0x489   : > { %v1177_v6 = vmul.f32 1.442695, %v1174_v57 }
 0x48b   : > { %2193 = vpow2.f32 %v1177_v6 }
 0x491   : > { %v2192_v7 = vpop.eup %2191 }
 0x492   : > { %v1179_v10 = vsel %vm1044_vm7, %v2192_v7, 0.0 }
 0x493   : > { %1180 = vadd.xlane.f32.xlu0 %v1179_v10 }
 0x495   : > { %v2194_v8 = vpop.eup %2193 }
 0x496   : > { %v1182_v0 = vsel %vm1044_vm7, %v2194_v8, 0.0 }
 0x497   : > { %1183 = vadd.xlane.f32.xlu1 %v1182_v0 }
 0x520   : > { %v1181_v9 = vpop.xlane.xlu0 %1180 }
 0x521   : > { %2195 = vrcp.f32 %v1181_v9 }
 0x524   : > { %v1184_v11 = vpop.xlane.xlu1 %1183 }
 0x525   : > { %2197 = vrcp.f32 %v1184_v11 }
 0x52b   : > { %v2196_v21 = vpop.eup %2195 }
 0x52c   : > { %v1187_v23 = vmul.f32 %v2196_v21, %v2192_v7 }
 0x52e   : > { %1902 = vmatprep.mubr.msk.f32.mxu0 %vm1044_vm7, %v1187_v23  ;;  %1545 = vrot.lane.b32.xlu1 %v1187_v23, %s2430_s21 }
 0x52f   : > { %v2198_v26 = vpop.eup %2197 }
 0x530   : > { %v1188_v30 = vmul.f32 %v2198_v26, %v2194_v8 }
 0x532   : > { %1547 = vrot.lane.b32.xlu1 %v1188_v30, %s2430_s21  ;;  %1903 = vmatmul.mubr.msk.f32.vlgmr.msra.gmra.mrb[12].mxu0 %vm1044_vm7, %v1188_v30 }
 0x5a0   : > { %v1546_v49 = vpop.permute.xlu1 %1545 }
 0x5a1   : > { %v1551_v51 = vsel %vm703_vm0, 0.0, %v1546_v49 }
 0x5a2   : > { %v1554_v54 = vsel %vm1553_vm8, %v1551_v51, 0.0 }
 0x5a4   : > { %v1548_v50 = vpop.permute.xlu1 %1547 }
 0x5a5   : > { %v1552_v52 = vsel %vm703_vm0, 0.0, %v1548_v50 }
 0x5a6   : > { %v1555_v60 = vsel %vm1553_vm8, %v1552_v52, 0.0 }
 0x605   : > { %v1904_v63 = vpop.f32.mrb[12].mxu0 }
 0x606   : > { %v1528_v46 = vmul.f32 %v1904_v63, %v1441_v44  ;;  %v1518_v47 = vpop.f32.mrb[13].mxu0 }
 0x607   : > { %v1527_v48 = vmul.f32 %v1518_v47, %v1440_v45 }
 0x609   : > { %1937 = vmatprep.mubr.f32.mxu1 %v1527_v48 }
 0x60a   : > { %1938 = vmatmul.mubr.f32.vlgmr.msra.gmra.mrb[8].mxu1 %v1528_v46 }
 0x6dd   : > { %v1939_v53 = vpop.f32.mrb[8].mxu1 }
 0x6de   : > { %v1622_v58 = vpop.f32.mrb[9].mxu1  ;;  %v1628_v62 = vadd.f32 %v1939_v53, %v1555_v60 }
 0x6df   : > { %v1623_v61 = vadd.f32 %v1622_v58, %v1554_v54 }
 0x6e0   : > { %1632 = vst [vmem:[%s689_s20 + $0x8] sm:$0xff] %v1628_v62 }
 0x6e1   : > { %1631 = vst [vmem:[%s689_s20] sm:$0xff] %v1623_v61 }
 0x6e2 PF: > { %p31_p5 = scmp.ge.s32.totalorder %s2687_s23, 4   ;;  %s2972_s27 = smov %s2407_s28 }
 0x6e3   : > { %s2973_s28 = smov %s2411_s29  ;;  %s2974_s29 = smov %s2698_s18 }
 0x6e4   : > { %s2975_s30 = smov %s2687_s23  ;;  %33 = sbr.rel (!%p31_p5) target bundleno = 18 (0x12), region = 155 }
 0x6eb   :  { %1655 = vsyncpa [#allocation3], 1 }
 0x6ec   :  { %1657 = vsyncpa [#allocation3 + $0x1], 1 }
 0x6ed   :  { %1658 = vsyncpa [#allocation5], 1 }
 0x6ee   :  { %1659 = vsyncpa [#allocation8], 1 }
 0x6ef   :  { %1660 = vsyncpa [#allocation11], 1 }

</bundles_post_ra>
